<compile_context>
chip_gen: v6e
topology: v6e:2x2x1
jax: 0.10.0
libtpu: 0.0.40
codegen_flags: <defaults>
</compile_context>

<pallas_src>
import functools

import jax
import jax.numpy as jnp
from jax.experimental import pallas as pl
from jax.experimental.pallas import tpu as pltpu


# ---------------------------------------------------------------------------
# Kernel 1: batch-tiled Conv1d(valid) + bias + Tanh + time-sum, scaled by the
#           precomputed reciprocal length.  One grid step handles TB rows.
# ---------------------------------------------------------------------------
def conv_mean_kernel(x_ref, w_ref, b_ref, invlen_ref, o_ref, *, K, L_out):
    # x_ref:      (L, TB, E)  bf16  time-major, so x_ref[t] is a 2-D (TB, E) tile
    # w_ref:      (K, E, H)   bf16  conv weight, tap-major
    # b_ref:      (1, H)      f32   bias
    # invlen_ref: (TB, 1)     f32   1/length per row (0 for padded rows)
    # o_ref:      (TB, H)     f32   sum_t tanh(conv)[t] / length
    b = b_ref[...]
    w_taps = [w_ref[k] for k in range(K)]          # K is small & static

    acc = jnp.zeros(o_ref.shape, jnp.float32)
    # TODO(synk): for very large L_out switch the static unroll to lax.fori_loop.
    for t in range(L_out):
        s = jnp.zeros(o_ref.shape, jnp.float32)
        for k in range(K):
            # (TB, E) @ (E, H) on the MXU with f32 accumulation.
            s = s + jnp.dot(x_ref[t + k], w_taps[k],
                            preferred_element_type=jnp.float32)
        acc = acc + jnp.tanh(s + b)

    # TODO(synk): H < 128 makes this a lane-masked store; for production sizes
    # pick H as a multiple of 128 (or pack rows into 128-lane slabs).
    o_ref[...] = acc * invlen_ref[...]


def conv_mean(x, w_keh, bias, lengths, *, tb=128, compute_dtype=jnp.bfloat16):
    """x: (B, L, E); w_keh: (K, E, H); bias: (H,); lengths: (B,).

    Returns (Bp, H) f32 means, Bp >= B (rows >= B are padding, never consumed).
    """
    B, L, E = x.shape
    K, _, H = w_keh.shape
    L_out = L - K + 1

    # Batch tile: one block if B is small, else a 16-sublane-aligned tile so the
    # grid has >= 2 steps (keeps both v7x TensorCores busy via "parallel").
    if B <= tb:
        TB, Bp = B, B
    else:
        TB = max(16, (tb // 16) * 16)
        Bp = ((B + TB - 1) // TB) * TB

    # (B, L, E) -> (L, B, E): tap slices become clean 2-D (TB, E) blocks.
    xt = jnp.transpose(x.astype(compute_dtype), (1, 0, 2))
    inv_len = (1.0 / lengths.astype(jnp.float32)).reshape(B, 1)
    if Bp != B:
        xt = jnp.pad(xt, ((0, 0), (0, Bp - B), (0, 0)))
        inv_len = jnp.pad(inv_len, ((0, Bp - B), (0, 0)))

    w = w_keh.astype(compute_dtype)
    b2 = bias.reshape(1, H).astype(jnp.float32)

    return pl.pallas_call(
        functools.partial(conv_mean_kernel, K=K, L_out=L_out),
        out_shape=jax.ShapeDtypeStruct((Bp, H), jnp.float32),
        grid_spec=pltpu.PrefetchScalarGridSpec(
            num_scalar_prefetch=0,
            grid=(Bp // TB,),
            in_specs=[
                pl.BlockSpec((L, TB, E), lambda i: (0, i, 0)),   # batch tile
                pl.BlockSpec((K, E, H), lambda i: (0, 0, 0)),    # full weight
                pl.BlockSpec((1, H), lambda i: (0, 0)),          # bias
                pl.BlockSpec((TB, 1), lambda i: (i, 0)),         # 1/length
            ],
            out_specs=pl.BlockSpec((TB, H), lambda i: (i, 0)),
        ),
        compiler_params=pltpu.CompilerParams(
            dimension_semantics=("parallel",)),
    )(xt, w, b2, inv_len)


# ---------------------------------------------------------------------------
# Kernel 2: fused rev-gather + (text + title)/2 + L2 normalize (p=2, eps=1e-12).
#           The rev index vectors are scalar-prefetched and drive the BlockSpec
#           index_maps, so the gather happens in the DMA, not as an XLA op.
# ---------------------------------------------------------------------------
def combine_kernel(trev_ref, xrev_ref, a_ref, b_ref, o_ref):
    # a_ref, b_ref, o_ref: (1, 1, H) f32; trev/xrev: SMEM prefetch (unused here).
    m = (a_ref[0] + b_ref[0]) * 0.5                         # (1, H)
    ss = jnp.sum(m * m, axis=-1, keepdims=True)             # (1, 1)
    # rsqrt(max(ss, eps^2)) == 1 / max(||m||, eps)  (torch F.normalize default)
    o_ref[0] = m * jax.lax.rsqrt(jnp.maximum(ss, 1e-24))


def combine_gather_norm(title_mean, text_mean, title_rev, text_rev):
    """title_mean/text_mean: (Bp, H) f32; *_rev: (B,) int. Returns (B, H)."""
    Bp_t, H = title_mean.shape
    Bp_x = text_mean.shape[0]
    B = title_rev.shape[0]

    a3 = title_mean.reshape(Bp_t, 1, H)
    b3 = text_mean.reshape(Bp_x, 1, H)

    out = pl.pallas_call(
        combine_kernel,
        out_shape=jax.ShapeDtypeStruct((B, 1, H), jnp.float32),
        grid_spec=pltpu.PrefetchScalarGridSpec(
            num_scalar_prefetch=2,
            grid=(B,),
            in_specs=[
                pl.BlockSpec((1, 1, H), lambda i, trev, xrev: (trev[i], 0, 0)),
                pl.BlockSpec((1, 1, H), lambda i, trev, xrev: (xrev[i], 0, 0)),
            ],
            out_specs=pl.BlockSpec((1, 1, H), lambda i, trev, xrev: (i, 0, 0)),
        ),
        compiler_params=pltpu.CompilerParams(
            dimension_semantics=("arbitrary",)),
    )(title_rev.astype(jnp.int32), text_rev.astype(jnp.int32), a3, b3)
    return out.reshape(B, H)


# ---------------------------------------------------------------------------
# CombinedCNN forward
# ---------------------------------------------------------------------------
def make_params(key, hidden_dim, emb_size, kernel_size):
    """Synthetic Conv1d params; PyTorch weight shape is (H, E, K)."""
    k1, k2 = jax.random.split(key)
    w_hek = jax.random.normal(k1, (hidden_dim, emb_size, kernel_size),
                              jnp.float32) * 0.1
    bias = jax.random.normal(k2, (hidden_dim,), jnp.float32) * 0.1
    # (H, E, K) -> (K, E, H): tap-major so each tap is a plain (E, H) matmul.
    w_keh = jnp.transpose(w_hek, (2, 1, 0))
    return w_keh, bias


def combined_cnn_forward(title_params, text_params,
                         title_input, title_lengths, title_rev,
                         text_input, text_lengths, text_rev):
    title_mean = conv_mean(title_input, title_params[0], title_params[1],
                           title_lengths)                       # (Bp, H)
    text_mean = conv_mean(text_input, text_params[0], text_params[1],
                          text_lengths)                         # (Bp, H)
    return combine_gather_norm(title_mean, text_mean, title_rev, text_rev)


# ---------------------------------------------------------------------------
# Pure-JAX f32 reference (mirrors the PyTorch forward in eval mode).
# ---------------------------------------------------------------------------
def ref_encoder(params, inp, lengths, rev):
    w_keh, bias = params
    K = w_keh.shape[0]
    L_out = inp.shape[1] - K + 1
    acc = sum(jnp.einsum("ble,eh->blh", inp[:, k:k + L_out, :], w_keh[k])
              for k in range(K)) + bias[None, None, :]
    states = jnp.tanh(acc)
    mean = jnp.sum(states, axis=1) / lengths[:, None]
    return mean[rev, :]


def ref_forward(title_params, text_params, ti, tl, tr, xi, xl, xr):
    tm = ref_encoder(title_params, ti, tl, tr)
    xm = ref_encoder(text_params, xi, xl, xr)
    m = (xm + tm) / 2.0
    n = jnp.maximum(jnp.sqrt(jnp.sum(m * m, axis=1, keepdims=True)), 1e-12)
    return m / n


if __name__ == "__main__":
    B, E, H, K = 2, 16, 32, 3
    L_TITLE, L_TEXT = 8, 12

    key = jax.random.PRNGKey(0)
    k_tw, k_xw, k_ti, k_xi = jax.random.split(key, 4)

    title_params = make_params(k_tw, H, E, K)
    text_params = make_params(k_xw, H, E, K)

    title_input = jax.random.normal(k_ti, (B, L_TITLE, E), jnp.float32)
    text_input = jax.random.normal(k_xi, (B, L_TEXT, E), jnp.float32)
    title_lengths = jnp.array([5.0, 6.0], jnp.float32)
    text_lengths = jnp.array([9.0, 10.0], jnp.float32)
    title_rev = jnp.array([1, 0], jnp.int32)
    text_rev = jnp.array([1, 0], jnp.int32)

    fwd = jax.jit(combined_cnn_forward)
    out = fwd(title_params, text_params,
              title_input, title_lengths, title_rev,
              text_input, text_lengths, text_rev)
    out = jax.block_until_ready(out)

    ref = ref_forward(title_params, text_params,
                      title_input, title_lengths, title_rev,
                      text_input, text_lengths, text_rev)

    assert out.shape == (B, H)
    # bf16 matmul inputs vs. f32 reference -> loose but decisive tolerance.
    assert jnp.allclose(out, ref, atol=2e-2, rtol=2e-2)

    print("KERNEL_OK")
</pallas_src>

<mosaic_0001>
module attributes {stable_mosaic.version = 11 : i64} {
  func.func @combine_kernel(%arg0: i32, %arg1: memref<2xi32, #tpu.memory_space<smem>>, %arg2: memref<2xi32, #tpu.memory_space<smem>>, %arg3: memref<1x1x32xf32, #tpu.memory_space<vmem>>, %arg4: memref<1x1x32xf32, #tpu.memory_space<vmem>>, %arg5: memref<1x1x32xf32, #tpu.memory_space<vmem>>) attributes {dimension_semantics = [#tpu.dimension_semantics<arbitrary>], iteration_bounds = array<i64: 2>, scalar_prefetch = 2 : i64, scratch_operands = 0 : i64, tpu.core_type = #tpu.core_type<tc>, window_params = [{transform_indices = @transform_0, window_bounds = array<i64: 1, 1, 32>}, {transform_indices = @transform_1, window_bounds = array<i64: 1, 1, 32>}, {transform_indices = @transform_2, window_bounds = array<i64: 1, 1, 32>}]} {
    %c0 = arith.constant 0 : index
    %c0_0 = arith.constant 0 : index
    %c0_1 = arith.constant 0 : index
    %0 = vector.load %arg3[%c0, %c0_0, %c0_1] : memref<1x1x32xf32, #tpu.memory_space<vmem>>, vector<1x1x32xf32>
    %1 = vector.shape_cast %0 : vector<1x1x32xf32> to vector<1x32xf32>
    %c0_2 = arith.constant 0 : index
    %c0_3 = arith.constant 0 : index
    %c0_4 = arith.constant 0 : index
    %2 = vector.load %arg4[%c0_2, %c0_3, %c0_4] : memref<1x1x32xf32, #tpu.memory_space<vmem>>, vector<1x1x32xf32>
    %3 = vector.shape_cast %2 : vector<1x1x32xf32> to vector<1x32xf32>
    %4 = arith.addf %1, %3 : vector<1x32xf32>
    %cst = arith.constant 5.000000e-01 : f32
    %5 = vector.broadcast %cst : f32 to vector<1x32xf32>
    %6 = arith.mulf %4, %5 : vector<1x32xf32>
    %7 = arith.mulf %6, %6 : vector<1x32xf32>
    %cst_5 = arith.constant dense<0.000000e+00> : vector<1xf32>
    %8 = vector.multi_reduction <add>, %7, %cst_5 [1] : vector<1x32xf32> to vector<1xf32>
    %9 = vector.shape_cast %8 : vector<1xf32> to vector<1x1xf32>
    %cst_6 = arith.constant 1.000000e-24 : f32
    %10 = vector.broadcast %cst_6 : f32 to vector<1x1xf32>
    %11 = arith.maximumf %9, %10 : vector<1x1xf32>
    %12 = math.rsqrt %11 : vector<1x1xf32>
    %13 = vector.broadcast %12 : vector<1x1xf32> to vector<1x32xf32>
    %14 = arith.mulf %6, %13 : vector<1x32xf32>
    %c0_7 = arith.constant 0 : index
    %c0_8 = arith.constant 0 : index
    %c0_9 = arith.constant 0 : index
    %15 = vector.load %arg5[%c0_7, %c0_8, %c0_9] : memref<1x1x32xf32, #tpu.memory_space<vmem>>, vector<1x1x32xf32>
    %16 = vector.shape_cast %15 : vector<1x1x32xf32> to vector<1x32xf32>
    %17 = vector.shape_cast %14 : vector<1x32xf32> to vector<1x1x32xf32>
    tpu.vector_store %arg5[%c0_7, %c0_8, %c0_9], %17 {strides = array<i32>} : memref<1x1x32xf32, #tpu.memory_space<vmem>>, vector<1x1x32xf32>,
    return
  }
  func.func @transform_0(%arg0: i32, %arg1: memref<2xi32, #tpu.memory_space<smem>>, %arg2: memref<2xi32, #tpu.memory_space<smem>>) -> (i32, i32, i32) {
    %0 = arith.index_cast %arg0 : i32 to index
    %1 = memref.load %arg1[%0] : memref<2xi32, #tpu.memory_space<smem>>
    %c0_i32 = arith.constant 0 : i32
    %c0_i32_0 = arith.constant 0 : i32
    %c0_i32_1 = arith.constant 0 : i32
    return %1, %c0_i32, %c0_i32_0 : i32, i32, i32
  }
  func.func @transform_1(%arg0: i32, %arg1: memref<2xi32, #tpu.memory_space<smem>>, %arg2: memref<2xi32, #tpu.memory_space<smem>>) -> (i32, i32, i32) {
    %0 = arith.index_cast %arg0 : i32 to index
    %1 = memref.load %arg2[%0] : memref<2xi32, #tpu.memory_space<smem>>
    %c0_i32 = arith.constant 0 : i32
    %c0_i32_0 = arith.constant 0 : i32
    %c0_i32_1 = arith.constant 0 : i32
    return %1, %c0_i32, %c0_i32_0 : i32, i32, i32
  }
  func.func @transform_2(%arg0: i32, %arg1: memref<2xi32, #tpu.memory_space<smem>>, %arg2: memref<2xi32, #tpu.memory_space<smem>>) -> (i32, i32, i32) {
    %c0_i32 = arith.constant 0 : i32
    %c0_i32_0 = arith.constant 0 : i32
    %c0_i32_1 = arith.constant 0 : i32
    return %arg0, %c0_i32, %c0_i32_0 : i32, i32, i32
  }
}

module attributes {stable_mosaic.version = 11 : i64} {
  func.func @conv_mean_kernel(%arg0: i32, %arg1: memref<8x2x16xbf16, #tpu.memory_space<vmem>>, %arg2: memref<3x16x32xbf16, #tpu.memory_space<vmem>>, %arg3: memref<1x32xf32, #tpu.memory_space<vmem>>, %arg4: memref<2x1xf32, #tpu.memory_space<vmem>>, %arg5: memref<2x32xf32, #tpu.memory_space<vmem>>) attributes {dimension_semantics = [#tpu.dimension_semantics<parallel>], iteration_bounds = array<i64: 1>, scalar_prefetch = 0 : i64, scratch_operands = 0 : i64, tpu.core_type = #tpu.core_type<tc>, window_params = [{transform_indices = @transform_0, window_bounds = array<i64: 8, 2, 16>}, {pipeline_mode = #tpu.pipeline_mode<synchronous>, transform_indices = @transform_1, window_bounds = array<i64: 3, 16, 32>}, {pipeline_mode = #tpu.pipeline_mode<synchronous>, transform_indices = @transform_2, window_bounds = array<i64: 1, 32>}, {transform_indices = @transform_3, window_bounds = array<i64: 2, 1>}, {transform_indices = @transform_4, window_bounds = array<i64: 2, 32>}]} {
    %c0 = arith.constant 0 : index
    %c0_0 = arith.constant 0 : index
    %0 = vector.load %arg3[%c0, %c0_0] : memref<1x32xf32, #tpu.memory_space<vmem>>, vector<1x32xf32>
    %c0_1 = arith.constant 0 : index
    %c0_2 = arith.constant 0 : index
    %c0_3 = arith.constant 0 : index
    %1 = vector.load %arg2[%c0_1, %c0_2, %c0_3] : memref<3x16x32xbf16, #tpu.memory_space<vmem>>, vector<1x16x32xbf16>
    %2 = vector.shape_cast %1 : vector<1x16x32xbf16> to vector<16x32xbf16>
    %c1 = arith.constant 1 : index
    %c0_4 = arith.constant 0 : index
    %c0_5 = arith.constant 0 : index
    %3 = vector.load %arg2[%c1, %c0_4, %c0_5] : memref<3x16x32xbf16, #tpu.memory_space<vmem>>, vector<1x16x32xbf16>
    %4 = vector.shape_cast %3 : vector<1x16x32xbf16> to vector<16x32xbf16>
    %c2 = arith.constant 2 : index
    %c0_6 = arith.constant 0 : index
    %c0_7 = arith.constant 0 : index
    %5 = vector.load %arg2[%c2, %c0_6, %c0_7] : memref<3x16x32xbf16, #tpu.memory_space<vmem>>, vector<1x16x32xbf16>
    %6 = vector.shape_cast %5 : vector<1x16x32xbf16> to vector<16x32xbf16>
    %cst = arith.constant 0.000000e+00 : f32
    %7 = vector.broadcast %cst : f32 to vector<2x32xf32>
    %cst_8 = arith.constant 0.000000e+00 : f32
    %8 = vector.broadcast %cst_8 : f32 to vector<2x32xf32>
    %c0_9 = arith.constant 0 : index
    %c0_10 = arith.constant 0 : index
    %c0_11 = arith.constant 0 : index
    %9 = vector.load %arg1[%c0_9, %c0_10, %c0_11] : memref<8x2x16xbf16, #tpu.memory_space<vmem>>, vector<1x2x16xbf16>
    %10 = vector.shape_cast %9 : vector<1x2x16xbf16> to vector<2x16xbf16>
    %cst_12 = arith.constant dense<0.000000e+00> : vector<2x32xf32>
    %11 = tpu.matmul %10, %2, %cst_12 {dimension_numbers = #tpu.dot_dimension_numbers<[1], [0], [0], [1], [0, 0, 1, 1], [], []>} : vector<2x16xbf16>, vector<16x32xbf16>, vector<2x32xf32> -> vector<2x32xf32>
    %12 = arith.addf %8, %11 : vector<2x32xf32>
    %c1_13 = arith.constant 1 : index
    %c0_14 = arith.constant 0 : index
    %c0_15 = arith.constant 0 : index
    %13 = vector.load %arg1[%c1_13, %c0_14, %c0_15] : memref<8x2x16xbf16, #tpu.memory_space<vmem>>, vector<1x2x16xbf16>
    %14 = vector.shape_cast %13 : vector<1x2x16xbf16> to vector<2x16xbf16>
    %cst_16 = arith.constant dense<0.000000e+00> : vector<2x32xf32>
    %15 = tpu.matmul %14, %4, %cst_16 {dimension_numbers = #tpu.dot_dimension_numbers<[1], [0], [0], [1], [0, 0, 1, 1], [], []>} : vector<2x16xbf16>, vector<16x32xbf16>, vector<2x32xf32> -> vector<2x32xf32>
    %16 = arith.addf %12, %15 : vector<2x32xf32>
    %c2_17 = arith.constant 2 : index
    %c0_18 = arith.constant 0 : index
    %c0_19 = arith.constant 0 : index
    %17 = vector.load %arg1[%c2_17, %c0_18, %c0_19] : memref<8x2x16xbf16, #tpu.memory_space<vmem>>, vector<1x2x16xbf16>
    %18 = vector.shape_cast %17 : vector<1x2x16xbf16> to vector<2x16xbf16>
    %cst_20 = arith.constant dense<0.000000e+00> : vector<2x32xf32>
    %19 = tpu.matmul %18, %6, %cst_20 {dimension_numbers = #tpu.dot_dimension_numbers<[1], [0], [0], [1], [0, 0, 1, 1], [], []>} : vector<2x16xbf16>, vector<16x32xbf16>, vector<2x32xf32> -> vector<2x32xf32>
    %20 = arith.addf %16, %19 : vector<2x32xf32>
    %21 = vector.broadcast %0 : vector<1x32xf32> to vector<2x32xf32>
    %22 = arith.addf %20, %21 : vector<2x32xf32>
    %23 = math.tanh %22 : vector<2x32xf32>
    %24 = arith.addf %7, %23 : vector<2x32xf32>
    %cst_21 = arith.constant 0.000000e+00 : f32
    %25 = vector.broadcast %cst_21 : f32 to vector<2x32xf32>
    %c1_22 = arith.constant 1 : index
    %c0_23 = arith.constant 0 : index
    %c0_24 = arith.constant 0 : index
    %26 = vector.load %arg1[%c1_22, %c0_23, %c0_24] : memref<8x2x16xbf16, #tpu.memory_space<vmem>>, vector<1x2x16xbf16>
    %27 = vector.shape_cast %26 : vector<1x2x16xbf16> to vector<2x16xbf16>
    %cst_25 = arith.constant dense<0.000000e+00> : vector<2x32xf32>
    %28 = tpu.matmul %27, %2, %cst_25 {dimension_numbers = #tpu.dot_dimension_numbers<[1], [0], [0], [1], [0, 0, 1, 1], [], []>} : vector<2x16xbf16>, vector<16x32xbf16>, vector<2x32xf32> -> vector<2x32xf32>
    %29 = arith.addf %25, %28 : vector<2x32xf32>
    %c2_26 = arith.constant 2 : index
    %c0_27 = arith.constant 0 : index
    %c0_28 = arith.constant 0 : index
    %30 = vector.load %arg1[%c2_26, %c0_27, %c0_28] : memref<8x2x16xbf16, #tpu.memory_space<vmem>>, vector<1x2x16xbf16>
    %31 = vector.shape_cast %30 : vector<1x2x16xbf16> to vector<2x16xbf16>
    %cst_29 = arith.constant dense<0.000000e+00> : vector<2x32xf32>
    %32 = tpu.matmul %31, %4, %cst_29 {dimension_numbers = #tpu.dot_dimension_numbers<[1], [0], [0], [1], [0, 0, 1, 1], [], []>} : vector<2x16xbf16>, vector<16x32xbf16>, vector<2x32xf32> -> vector<2x32xf32>
    %33 = arith.addf %29, %32 : vector<2x32xf32>
    %c3 = arith.constant 3 : index
    %c0_30 = arith.constant 0 : index
    %c0_31 = arith.constant 0 : index
    %34 = vector.load %arg1[%c3, %c0_30, %c0_31] : memref<8x2x16xbf16, #tpu.memory_space<vmem>>, vector<1x2x16xbf16>
    %35 = vector.shape_cast %34 : vector<1x2x16xbf16> to vector<2x16xbf16>
    %cst_32 = arith.constant dense<0.000000e+00> : vector<2x32xf32>
    %36 = tpu.matmul %35, %6, %cst_32 {dimension_numbers = #tpu.dot_dimension_numbers<[1], [0], [0], [1], [0, 0, 1, 1], [], []>} : vector<2x16xbf16>, vector<16x32xbf16>, vector<2x32xf32> -> vector<2x32xf32>
    %37 = arith.addf %33, %36 : vector<2x32xf32>
    %38 = vector.broadcast %0 : vector<1x32xf32> to vector<2x32xf32>
    %39 = arith.addf %37, %38 : vector<2x32xf32>
    %40 = math.tanh %39 : vector<2x32xf32>
    %41 = arith.addf %24, %40 : vector<2x32xf32>
    %cst_33 = arith.constant 0.000000e+00 : f32
    %42 = vector.broadcast %cst_33 : f32 to vector<2x32xf32>
    %c2_34 = arith.constant 2 : index
    %c0_35 = arith.constant 0 : index
    %c0_36 = arith.constant 0 : index
    %43 = vector.load %arg1[%c2_34, %c0_35, %c0_36] : memref<8x2x16xbf16, #tpu.memory_space<vmem>>, vector<1x2x16xbf16>
    %44 = vector.shape_cast %43 : vector<1x2x16xbf16> to vector<2x16xbf16>
    %cst_37 = arith.constant dense<0.000000e+00> : vector<2x32xf32>
    %45 = tpu.matmul %44, %2, %cst_37 {dimension_numbers = #tpu.dot_dimension_numbers<[1], [0], [0], [1], [0, 0, 1, 1], [], []>} : vector<2x16xbf16>, vector<16x32xbf16>, vector<2x32xf32> -> vector<2x32xf32>
    %46 = arith.addf %42, %45 : vector<2x32xf32>
    %c3_38 = arith.constant 3 : index
    %c0_39 = arith.constant 0 : index
    %c0_40 = arith.constant 0 : index
    %47 = vector.load %arg1[%c3_38, %c0_39, %c0_40] : memref<8x2x16xbf16, #tpu.memory_space<vmem>>, vector<1x2x16xbf16>
    %48 = vector.shape_cast %47 : vector<1x2x16xbf16> to vector<2x16xbf16>
    %cst_41 = arith.constant dense<0.000000e+00> : vector<2x32xf32>
    %49 = tpu.matmul %48, %4, %cst_41 {dimension_numbers = #tpu.dot_dimension_numbers<[1], [0], [0], [1], [0, 0, 1, 1], [], []>} : vector<2x16xbf16>, vector<16x32xbf16>, vector<2x32xf32> -> vector<2x32xf32>
    %50 = arith.addf %46, %49 : vector<2x32xf32>
    %c4 = arith.constant 4 : index
    %c0_42 = arith.constant 0 : index
    %c0_43 = arith.constant 0 : index
    %51 = vector.load %arg1[%c4, %c0_42, %c0_43] : memref<8x2x16xbf16, #tpu.memory_space<vmem>>, vector<1x2x16xbf16>
    %52 = vector.shape_cast %51 : vector<1x2x16xbf16> to vector<2x16xbf16>
    %cst_44 = arith.constant dense<0.000000e+00> : vector<2x32xf32>
    %53 = tpu.matmul %52, %6, %cst_44 {dimension_numbers = #tpu.dot_dimension_numbers<[1], [0], [0], [1], [0, 0, 1, 1], [], []>} : vector<2x16xbf16>, vector<16x32xbf16>, vector<2x32xf32> -> vector<2x32xf32>
    %54 = arith.addf %50, %53 : vector<2x32xf32>
    %55 = vector.broadcast %0 : vector<1x32xf32> to vector<2x32xf32>
    %56 = arith.addf %54, %55 : vector<2x32xf32>
    %57 = math.tanh %56 : vector<2x32xf32>
    %58 = arith.addf %41, %57 : vector<2x32xf32>
    %cst_45 = arith.constant 0.000000e+00 : f32
    %59 = vector.broadcast %cst_45 : f32 to vector<2x32xf32>
    %c3_46 = arith.constant 3 : index
    %c0_47 = arith.constant 0 : index
    %c0_48 = arith.constant 0 : index
    %60 = vector.load %arg1[%c3_46, %c0_47, %c0_48] : memref<8x2x16xbf16, #tpu.memory_space<vmem>>, vector<1x2x16xbf16>
    %61 = vector.shape_cast %60 : vector<1x2x16xbf16> to vector<2x16xbf16>
    %cst_49 = arith.constant dense<0.000000e+00> : vector<2x32xf32>
    %62 = tpu.matmul %61, %2, %cst_49 {dimension_numbers = #tpu.dot_dimension_numbers<[1], [0], [0], [1], [0, 0, 1, 1], [], []>} : vector<2x16xbf16>, vector<16x32xbf16>, vector<2x32xf32> -> vector<2x32xf32>
    %63 = arith.addf %59, %62 : vector<2x32xf32>
    %c4_50 = arith.constant 4 : index
    %c0_51 = arith.constant 0 : index
    %c0_52 = arith.constant 0 : index
    %64 = vector.load %arg1[%c4_50, %c0_51, %c0_52] : memref<8x2x16xbf16, #tpu.memory_space<vmem>>, vector<1x2x16xbf16>
    %65 = vector.shape_cast %64 : vector<1x2x16xbf16> to vector<2x16xbf16>
    %cst_53 = arith.constant dense<0.000000e+00> : vector<2x32xf32>
    %66 = tpu.matmul %65, %4, %cst_53 {dimension_numbers = #tpu.dot_dimension_numbers<[1], [0], [0], [1], [0, 0, 1, 1], [], []>} : vector<2x16xbf16>, vector<16x32xbf16>, vector<2x32xf32> -> vector<2x32xf32>
    %67 = arith.addf %63, %66 : vector<2x32xf32>
    %c5 = arith.constant 5 : index
    %c0_54 = arith.constant 0 : index
    %c0_55 = arith.constant 0 : index
    %68 = vector.load %arg1[%c5, %c0_54, %c0_55] : memref<8x2x16xbf16, #tpu.memory_space<vmem>>, vector<1x2x16xbf16>
    %69 = vector.shape_cast %68 : vector<1x2x16xbf16> to vector<2x16xbf16>
    %cst_56 = arith.constant dense<0.000000e+00> : vector<2x32xf32>
    %70 = tpu.matmul %69, %6, %cst_56 {dimension_numbers = #tpu.dot_dimension_numbers<[1], [0], [0], [1], [0, 0, 1, 1], [], []>} : vector<2x16xbf16>, vector<16x32xbf16>, vector<2x32xf32> -> vector<2x32xf32>
    %71 = arith.addf %67, %70 : vector<2x32xf32>
    %72 = vector.broadcast %0 : vector<1x32xf32> to vector<2x32xf32>
    %73 = arith.addf %71, %72 : vector<2x32xf32>
    %74 = math.tanh %73 : vector<2x32xf32>
    %75 = arith.addf %58, %74 : vector<2x32xf32>
    %cst_57 = arith.constant 0.000000e+00 : f32
    %76 = vector.broadcast %cst_57 : f32 to vector<2x32xf32>
    %c4_58 = arith.constant 4 : index
    %c0_59 = arith.constant 0 : index
    %c0_60 = arith.constant 0 : index
    %77 = vector.load %arg1[%c4_58, %c0_59, %c0_60] : memref<8x2x16xbf16, #tpu.memory_space<vmem>>, vector<1x2x16xbf16>
    %78 = vector.shape_cast %77 : vector<1x2x16xbf16> to vector<2x16xbf16>
    %cst_61 = arith.constant dense<0.000000e+00> : vector<2x32xf32>
    %79 = tpu.matmul %78, %2, %cst_61 {dimension_numbers = #tpu.dot_dimension_numbers<[1], [0], [0], [1], [0, 0, 1, 1], [], []>} : vector<2x16xbf16>, vector<16x32xbf16>, vector<2x32xf32> -> vector<2x32xf32>
    %80 = arith.addf %76, %79 : vector<2x32xf32>
    %c5_62 = arith.constant 5 : index
    %c0_63 = arith.constant 0 : index
    %c0_64 = arith.constant 0 : index
    %81 = vector.load %arg1[%c5_62, %c0_63, %c0_64] : memref<8x2x16xbf16, #tpu.memory_space<vmem>>, vector<1x2x16xbf16>
    %82 = vector.shape_cast %81 : vector<1x2x16xbf16> to vector<2x16xbf16>
    %cst_65 = arith.constant dense<0.000000e+00> : vector<2x32xf32>
    %83 = tpu.matmul %82, %4, %cst_65 {dimension_numbers = #tpu.dot_dimension_numbers<[1], [0], [0], [1], [0, 0, 1, 1], [], []>} : vector<2x16xbf16>, vector<16x32xbf16>, vector<2x32xf32> -> vector<2x32xf32>
    %84 = arith.addf %80, %83 : vector<2x32xf32>
    %c6 = arith.constant 6 : index
    %c0_66 = arith.constant 0 : index
    %c0_67 = arith.constant 0 : index
    %85 = vector.load %arg1[%c6, %c0_66, %c0_67] : memref<8x2x16xbf16, #tpu.memory_space<vmem>>, vector<1x2x16xbf16>
    %86 = vector.shape_cast %85 : vector<1x2x16xbf16> to vector<2x16xbf16>
    %cst_68 = arith.constant dense<0.000000e+00> : vector<2x32xf32>
    %87 = tpu.matmul %86, %6, %cst_68 {dimension_numbers = #tpu.dot_dimension_numbers<[1], [0], [0], [1], [0, 0, 1, 1], [], []>} : vector<2x16xbf16>, vector<16x32xbf16>, vector<2x32xf32> -> vector<2x32xf32>
    %88 = arith.addf %84, %87 : vector<2x32xf32>
    %89 = vector.broadcast %0 : vector<1x32xf32> to vector<2x32xf32>
    %90 = arith.addf %88, %89 : vector<2x32xf32>
    %91 = math.tanh %90 : vector<2x32xf32>
    %92 = arith.addf %75, %91 : vector<2x32xf32>
    %cst_69 = arith.constant 0.000000e+00 : f32
    %93 = vector.broadcast %cst_69 : f32 to vector<2x32xf32>
    %c5_70 = arith.constant 5 : index
    %c0_71 = arith.constant 0 : index
    %c0_72 = arith.constant 0 : index
    %94 = vector.load %arg1[%c5_70, %c0_71, %c0_72] : memref<8x2x16xbf16, #tpu.memory_space<vmem>>, vector<1x2x16xbf16>
    %95 = vector.shape_cast %94 : vector<1x2x16xbf16> to vector<2x16xbf16>
    %cst_73 = arith.constant dense<0.000000e+00> : vector<2x32xf32>
    %96 = tpu.matmul %95, %2, %cst_73 {dimension_numbers = #tpu.dot_dimension_numbers<[1], [0], [0], [1], [0, 0, 1, 1], [], []>} : vector<2x16xbf16>, vector<16x32xbf16>, vector<2x32xf32> -> vector<2x32xf32>
    %97 = arith.addf %93, %96 : vector<2x32xf32>
    %c6_74 = arith.constant 6 : index
    %c0_75 = arith.constant 0 : index
    %c0_76 = arith.constant 0 : index
    %98 = vector.load %arg1[%c6_74, %c0_75, %c0_76] : memref<8x2x16xbf16, #tpu.memory_space<vmem>>, vector<1x2x16xbf16>
    %99 = vector.shape_cast %98 : vector<1x2x16xbf16> to vector<2x16xbf16>
    %cst_77 = arith.constant dense<0.000000e+00> : vector<2x32xf32>
    %100 = tpu.matmul %99, %4, %cst_77 {dimension_numbers = #tpu.dot_dimension_numbers<[1], [0], [0], [1], [0, 0, 1, 1], [], []>} : vector<2x16xbf16>, vector<16x32xbf16>, vector<2x32xf32> -> vector<2x32xf32>
    %101 = arith.addf %97, %100 : vector<2x32xf32>
    %c7 = arith.constant 7 : index
    %c0_78 = arith.constant 0 : index
    %c0_79 = arith.constant 0 : index
    %102 = vector.load %arg1[%c7, %c0_78, %c0_79] : memref<8x2x16xbf16, #tpu.memory_space<vmem>>, vector<1x2x16xbf16>
    %103 = vector.shape_cast %102 : vector<1x2x16xbf16> to vector<2x16xbf16>
    %cst_80 = arith.constant dense<0.000000e+00> : vector<2x32xf32>
    %104 = tpu.matmul %103, %6, %cst_80 {dimension_numbers = #tpu.dot_dimension_numbers<[1], [0], [0], [1], [0, 0, 1, 1], [], []>} : vector<2x16xbf16>, vector<16x32xbf16>, vector<2x32xf32> -> vector<2x32xf32>
    %105 = arith.addf %101, %104 : vector<2x32xf32>
    %106 = vector.broadcast %0 : vector<1x32xf32> to vector<2x32xf32>
    %107 = arith.addf %105, %106 : vector<2x32xf32>
    %108 = math.tanh %107 : vector<2x32xf32>
    %109 = arith.addf %92, %108 : vector<2x32xf32>
    %c0_81 = arith.constant 0 : index
    %c0_82 = arith.constant 0 : index
    %110 = vector.load %arg4[%c0_81, %c0_82] : memref<2x1xf32, #tpu.memory_space<vmem>>, vector<2x1xf32>
    %111 = vector.broadcast %110 : vector<2x1xf32> to vector<2x32xf32>
    %112 = arith.mulf %109, %111 : vector<2x32xf32>
    %c0_83 = arith.constant 0 : index
    %c0_84 = arith.constant 0 : index
    %113 = vector.load %arg5[%c0_83, %c0_84] : memref<2x32xf32, #tpu.memory_space<vmem>>, vector<2x32xf32>
    tpu.vector_store %arg5[%c0_83, %c0_84], %112 {strides = array<i32>} : memref<2x32xf32, #tpu.memory_space<vmem>>, vector<2x32xf32>,
    return
  }
  func.func @transform_0(%arg0: i32) -> (i32, i32, i32) {
    %c0_i32 = arith.constant 0 : i32
    %c0_i32_0 = arith.constant 0 : i32
    %c0_i32_1 = arith.constant 0 : i32
    return %c0_i32, %arg0, %c0_i32_0 : i32, i32, i32
  }
  func.func @transform_1(%arg0: i32) -> (i32, i32, i32) {
    %c0_i32 = arith.constant 0 : i32
    %c0_i32_0 = arith.constant 0 : i32
    %c0_i32_1 = arith.constant 0 : i32
    %c0_i32_2 = arith.constant 0 : i32
    return %c0_i32, %c0_i32_0, %c0_i32_1 : i32, i32, i32
  }
  func.func @transform_2(%arg0: i32) -> (i32, i32) {
    %c0_i32 = arith.constant 0 : i32
    %c0_i32_0 = arith.constant 0 : i32
    %c0_i32_1 = arith.constant 0 : i32
    return %c0_i32, %c0_i32_0 : i32, i32
  }
  func.func @transform_3(%arg0: i32) -> (i32, i32) {
    %c0_i32 = arith.constant 0 : i32
    %c0_i32_0 = arith.constant 0 : i32
    return %arg0, %c0_i32 : i32, i32
  }
  func.func @transform_4(%arg0: i32) -> (i32, i32) {
    %c0_i32 = arith.constant 0 : i32
    %c0_i32_0 = arith.constant 0 : i32
    return %arg0, %c0_i32 : i32, i32
  }
}

module attributes {stable_mosaic.version = 11 : i64} {
  func.func @conv_mean_kernel(%arg0: i32, %arg1: memref<12x2x16xbf16, #tpu.memory_space<vmem>>, %arg2: memref<3x16x32xbf16, #tpu.memory_space<vmem>>, %arg3: memref<1x32xf32, #tpu.memory_space<vmem>>, %arg4: memref<2x1xf32, #tpu.memory_space<vmem>>, %arg5: memref<2x32xf32, #tpu.memory_space<vmem>>) attributes {dimension_semantics = [#tpu.dimension_semantics<parallel>], iteration_bounds = array<i64: 1>, scalar_prefetch = 0 : i64, scratch_operands = 0 : i64, tpu.core_type = #tpu.core_type<tc>, window_params = [{transform_indices = @transform_0, window_bounds = array<i64: 12, 2, 16>}, {pipeline_mode = #tpu.pipeline_mode<synchronous>, transform_indices = @transform_1, window_bounds = array<i64: 3, 16, 32>}, {pipeline_mode = #tpu.pipeline_mode<synchronous>, transform_indices = @transform_2, window_bounds = array<i64: 1, 32>}, {transform_indices = @transform_3, window_bounds = array<i64: 2, 1>}, {transform_indices = @transform_4, window_bounds = array<i64: 2, 32>}]} {
    %c0 = arith.constant 0 : index
    %c0_0 = arith.constant 0 : index
    %0 = vector.load %arg3[%c0, %c0_0] : memref<1x32xf32, #tpu.memory_space<vmem>>, vector<1x32xf32>
    %c0_1 = arith.constant 0 : index
    %c0_2 = arith.constant 0 : index
    %c0_3 = arith.constant 0 : index
    %1 = vector.load %arg2[%c0_1, %c0_2, %c0_3] : memref<3x16x32xbf16, #tpu.memory_space<vmem>>, vector<1x16x32xbf16>
    %2 = vector.shape_cast %1 : vector<1x16x32xbf16> to vector<16x32xbf16>
    %c1 = arith.constant 1 : index
    %c0_4 = arith.constant 0 : index
    %c0_5 = arith.constant 0 : index
    %3 = vector.load %arg2[%c1, %c0_4, %c0_5] : memref<3x16x32xbf16, #tpu.memory_space<vmem>>, vector<1x16x32xbf16>
    %4 = vector.shape_cast %3 : vector<1x16x32xbf16> to vector<16x32xbf16>
    %c2 = arith.constant 2 : index
    %c0_6 = arith.constant 0 : index
    %c0_7 = arith.constant 0 : index
    %5 = vector.load %arg2[%c2, %c0_6, %c0_7] : memref<3x16x32xbf16, #tpu.memory_space<vmem>>, vector<1x16x32xbf16>
    %6 = vector.shape_cast %5 : vector<1x16x32xbf16> to vector<16x32xbf16>
    %cst = arith.constant 0.000000e+00 : f32
    %7 = vector.broadcast %cst : f32 to vector<2x32xf32>
    %cst_8 = arith.constant 0.000000e+00 : f32
    %8 = vector.broadcast %cst_8 : f32 to vector<2x32xf32>
    %c0_9 = arith.constant 0 : index
    %c0_10 = arith.constant 0 : index
    %c0_11 = arith.constant 0 : index
    %9 = vector.load %arg1[%c0_9, %c0_10, %c0_11] : memref<12x2x16xbf16, #tpu.memory_space<vmem>>, vector<1x2x16xbf16>
    %10 = vector.shape_cast %9 : vector<1x2x16xbf16> to vector<2x16xbf16>
    %cst_12 = arith.constant dense<0.000000e+00> : vector<2x32xf32>
    %11 = tpu.matmul %10, %2, %cst_12 {dimension_numbers = #tpu.dot_dimension_numbers<[1], [0], [0], [1], [0, 0, 1, 1], [], []>} : vector<2x16xbf16>, vector<16x32xbf16>, vector<2x32xf32> -> vector<2x32xf32>
    %12 = arith.addf %8, %11 : vector<2x32xf32>
    %c1_13 = arith.constant 1 : index
    %c0_14 = arith.constant 0 : index
    %c0_15 = arith.constant 0 : index
    %13 = vector.load %arg1[%c1_13, %c0_14, %c0_15] : memref<12x2x16xbf16, #tpu.memory_space<vmem>>, vector<1x2x16xbf16>
    %14 = vector.shape_cast %13 : vector<1x2x16xbf16> to vector<2x16xbf16>
    %cst_16 = arith.constant dense<0.000000e+00> : vector<2x32xf32>
    %15 = tpu.matmul %14, %4, %cst_16 {dimension_numbers = #tpu.dot_dimension_numbers<[1], [0], [0], [1], [0, 0, 1, 1], [], []>} : vector<2x16xbf16>, vector<16x32xbf16>, vector<2x32xf32> -> vector<2x32xf32>
    %16 = arith.addf %12, %15 : vector<2x32xf32>
    %c2_17 = arith.constant 2 : index
    %c0_18 = arith.constant 0 : index
    %c0_19 = arith.constant 0 : index
    %17 = vector.load %arg1[%c2_17, %c0_18, %c0_19] : memref<12x2x16xbf16, #tpu.memory_space<vmem>>, vector<1x2x16xbf16>
    %18 = vector.shape_cast %17 : vector<1x2x16xbf16> to vector<2x16xbf16>
    %cst_20 = arith.constant dense<0.000000e+00> : vector<2x32xf32>
    %19 = tpu.matmul %18, %6, %cst_20 {dimension_numbers = #tpu.dot_dimension_numbers<[1], [0], [0], [1], [0, 0, 1, 1], [], []>} : vector<2x16xbf16>, vector<16x32xbf16>, vector<2x32xf32> -> vector<2x32xf32>
    %20 = arith.addf %16, %19 : vector<2x32xf32>
    %21 = vector.broadcast %0 : vector<1x32xf32> to vector<2x32xf32>
    %22 = arith.addf %20, %21 : vector<2x32xf32>
    %23 = math.tanh %22 : vector<2x32xf32>
    %24 = arith.addf %7, %23 : vector<2x32xf32>
    %cst_21 = arith.constant 0.000000e+00 : f32
    %25 = vector.broadcast %cst_21 : f32 to vector<2x32xf32>
    %c1_22 = arith.constant 1 : index
    %c0_23 = arith.constant 0 : index
    %c0_24 = arith.constant 0 : index
    %26 = vector.load %arg1[%c1_22, %c0_23, %c0_24] : memref<12x2x16xbf16, #tpu.memory_space<vmem>>, vector<1x2x16xbf16>
    %27 = vector.shape_cast %26 : vector<1x2x16xbf16> to vector<2x16xbf16>
    %cst_25 = arith.constant dense<0.000000e+00> : vector<2x32xf32>
    %28 = tpu.matmul %27, %2, %cst_25 {dimension_numbers = #tpu.dot_dimension_numbers<[1], [0], [0], [1], [0, 0, 1, 1], [], []>} : vector<2x16xbf16>, vector<16x32xbf16>, vector<2x32xf32> -> vector<2x32xf32>
    %29 = arith.addf %25, %28 : vector<2x32xf32>
    %c2_26 = arith.constant 2 : index
    %c0_27 = arith.constant 0 : index
    %c0_28 = arith.constant 0 : index
    %30 = vector.load %arg1[%c2_26, %c0_27, %c0_28] : memref<12x2x16xbf16, #tpu.memory_space<vmem>>, vector<1x2x16xbf16>
    %31 = vector.shape_cast %30 : vector<1x2x16xbf16> to vector<2x16xbf16>
    %cst_29 = arith.constant dense<0.000000e+00> : vector<2x32xf32>
    %32 = tpu.matmul %31, %4, %cst_29 {dimension_numbers = #tpu.dot_dimension_numbers<[1], [0], [0], [1], [0, 0, 1, 1], [], []>} : vector<2x16xbf16>, vector<16x32xbf16>, vector<2x32xf32> -> vector<2x32xf32>
    %33 = arith.addf %29, %32 : vector<2x32xf32>
    %c3 = arith.constant 3 : index
    %c0_30 = arith.constant 0 : index
    %c0_31 = arith.constant 0 : index
    %34 = vector.load %arg1[%c3, %c0_30, %c0_31] : memref<12x2x16xbf16, #tpu.memory_space<vmem>>, vector<1x2x16xbf16>
    %35 = vector.shape_cast %34 : vector<1x2x16xbf16> to vector<2x16xbf16>
    %cst_32 = arith.constant dense<0.000000e+00> : vector<2x32xf32>
    %36 = tpu.matmul %35, %6, %cst_32 {dimension_numbers = #tpu.dot_dimension_numbers<[1], [0], [0], [1], [0, 0, 1, 1], [], []>} : vector<2x16xbf16>, vector<16x32xbf16>, vector<2x32xf32> -> vector<2x32xf32>
    %37 = arith.addf %33, %36 : vector<2x32xf32>
    %38 = vector.broadcast %0 : vector<1x32xf32> to vector<2x32xf32>
    %39 = arith.addf %37, %38 : vector<2x32xf32>
    %40 = math.tanh %39 : vector<2x32xf32>
    %41 = arith.addf %24, %40 : vector<2x32xf32>
    %cst_33 = arith.constant 0.000000e+00 : f32
    %42 = vector.broadcast %cst_33 : f32 to vector<2x32xf32>
    %c2_34 = arith.constant 2 : index
    %c0_35 = arith.constant 0 : index
    %c0_36 = arith.constant 0 : index
    %43 = vector.load %arg1[%c2_34, %c0_35, %c0_36] : memref<12x2x16xbf16, #tpu.memory_space<vmem>>, vector<1x2x16xbf16>
    %44 = vector.shape_cast %43 : vector<1x2x16xbf16> to vector<2x16xbf16>
    %cst_37 = arith.constant dense<0.000000e+00> : vector<2x32xf32>
    %45 = tpu.matmul %44, %2, %cst_37 {dimension_numbers = #tpu.dot_dimension_numbers<[1], [0], [0], [1], [0, 0, 1, 1], [], []>} : vector<2x16xbf16>, vector<16x32xbf16>, vector<2x32xf32> -> vector<2x32xf32>
    %46 = arith.addf %42, %45 : vector<2x32xf32>
    %c3_38 = arith.constant 3 : index
    %c0_39 = arith.constant 0 : index
    %c0_40 = arith.constant 0 : index
    %47 = vector.load %arg1[%c3_38, %c0_39, %c0_40] : memref<12x2x16xbf16, #tpu.memory_space<vmem>>, vector<1x2x16xbf16>
    %48 = vector.shape_cast %47 : vector<1x2x16xbf16> to vector<2x16xbf16>
    %cst_41 = arith.constant dense<0.000000e+00> : vector<2x32xf32>
    %49 = tpu.matmul %48, %4, %cst_41 {dimension_numbers = #tpu.dot_dimension_numbers<[1], [0], [0], [1], [0, 0, 1, 1], [], []>} : vector<2x16xbf16>, vector<16x32xbf16>, vector<2x32xf32> -> vector<2x32xf32>
    %50 = arith.addf %46, %49 : vector<2x32xf32>
    %c4 = arith.constant 4 : index
    %c0_42 = arith.constant 0 : index
    %c0_43 = arith.constant 0 : index
    %51 = vector.load %arg1[%c4, %c0_42, %c0_43] : memref<12x2x16xbf16, #tpu.memory_space<vmem>>, vector<1x2x16xbf16>
    %52 = vector.shape_cast %51 : vector<1x2x16xbf16> to vector<2x16xbf16>
    %cst_44 = arith.constant dense<0.000000e+00> : vector<2x32xf32>
    %53 = tpu.matmul %52, %6, %cst_44 {dimension_numbers = #tpu.dot_dimension_numbers<[1], [0], [0], [1], [0, 0, 1, 1], [], []>} : vector<2x16xbf16>, vector<16x32xbf16>, vector<2x32xf32> -> vector<2x32xf32>
    %54 = arith.addf %50, %53 : vector<2x32xf32>
    %55 = vector.broadcast %0 : vector<1x32xf32> to vector<2x32xf32>
    %56 = arith.addf %54, %55 : vector<2x32xf32>
    %57 = math.tanh %56 : vector<2x32xf32>
    %58 = arith.addf %41, %57 : vector<2x32xf32>
    %cst_45 = arith.constant 0.000000e+00 : f32
    %59 = vector.broadcast %cst_45 : f32 to vector<2x32xf32>
    %c3_46 = arith.constant 3 : index
    %c0_47 = arith.constant 0 : index
    %c0_48 = arith.constant 0 : index
    %60 = vector.load %arg1[%c3_46, %c0_47, %c0_48] : memref<12x2x16xbf16, #tpu.memory_space<vmem>>, vector<1x2x16xbf16>
    %61 = vector.shape_cast %60 : vector<1x2x16xbf16> to vector<2x16xbf16>
    %cst_49 = arith.constant dense<0.000000e+00> : vector<2x32xf32>
    %62 = tpu.matmul %61, %2, %cst_49 {dimension_numbers = #tpu.dot_dimension_numbers<[1], [0], [0], [1], [0, 0, 1, 1], [], []>} : vector<2x16xbf16>, vector<16x32xbf16>, vector<2x32xf32> -> vector<2x32xf32>
    %63 = arith.addf %59, %62 : vector<2x32xf32>
    %c4_50 = arith.constant 4 : index
    %c0_51 = arith.constant 0 : index
    %c0_52 = arith.constant 0 : index
    %64 = vector.load %arg1[%c4_50, %c0_51, %c0_52] : memref<12x2x16xbf16, #tpu.memory_space<vmem>>, vector<1x2x16xbf16>
    %65 = vector.shape_cast %64 : vector<1x2x16xbf16> to vector<2x16xbf16>
    %cst_53 = arith.constant dense<0.000000e+00> : vector<2x32xf32>
    %66 = tpu.matmul %65, %4, %cst_53 {dimension_numbers = #tpu.dot_dimension_numbers<[1], [0], [0], [1], [0, 0, 1, 1], [], []>} : vector<2x16xbf16>, vector<16x32xbf16>, vector<2x32xf32> -> vector<2x32xf32>
    %67 = arith.addf %63, %66 : vector<2x32xf32>
    %c5 = arith.constant 5 : index
    %c0_54 = arith.constant 0 : index
    %c0_55 = arith.constant 0 : index
    %68 = vector.load %arg1[%c5, %c0_54, %c0_55] : memref<12x2x16xbf16, #tpu.memory_space<vmem>>, vector<1x2x16xbf16>
    %69 = vector.shape_cast %68 : vector<1x2x16xbf16> to vector<2x16xbf16>
    %cst_56 = arith.constant dense<0.000000e+00> : vector<2x32xf32>
    %70 = tpu.matmul %69, %6, %cst_56 {dimension_numbers = #tpu.dot_dimension_numbers<[1], [0], [0], [1], [0, 0, 1, 1], [], []>} : vector<2x16xbf16>, vector<16x32xbf16>, vector<2x32xf32> -> vector<2x32xf32>
    %71 = arith.addf %67, %70 : vector<2x32xf32>
    %72 = vector.broadcast %0 : vector<1x32xf32> to vector<2x32xf32>
    %73 = arith.addf %71, %72 : vector<2x32xf32>
    %74 = math.tanh %73 : vector<2x32xf32>
    %75 = arith.addf %58, %74 : vector<2x32xf32>
    %cst_57 = arith.constant 0.000000e+00 : f32
    %76 = vector.broadcast %cst_57 : f32 to vector<2x32xf32>
    %c4_58 = arith.constant 4 : index
    %c0_59 = arith.constant 0 : index
    %c0_60 = arith.constant 0 : index
    %77 = vector.load %arg1[%c4_58, %c0_59, %c0_60] : memref<12x2x16xbf16, #tpu.memory_space<vmem>>, vector<1x2x16xbf16>
    %78 = vector.shape_cast %77 : vector<1x2x16xbf16> to vector<2x16xbf16>
    %cst_61 = arith.constant dense<0.000000e+00> : vector<2x32xf32>
    %79 = tpu.matmul %78, %2, %cst_61 {dimension_numbers = #tpu.dot_dimension_numbers<[1], [0], [0], [1], [0, 0, 1, 1], [], []>} : vector<2x16xbf16>, vector<16x32xbf16>, vector<2x32xf32> -> vector<2x32xf32>
    %80 = arith.addf %76, %79 : vector<2x32xf32>
    %c5_62 = arith.constant 5 : index
    %c0_63 = arith.constant 0 : index
    %c0_64 = arith.constant 0 : index
    %81 = vector.load %arg1[%c5_62, %c0_63, %c0_64] : memref<12x2x16xbf16, #tpu.memory_space<vmem>>, vector<1x2x16xbf16>
    %82 = vector.shape_cast %81 : vector<1x2x16xbf16> to vector<2x16xbf16>
    %cst_65 = arith.constant dense<0.000000e+00> : vector<2x32xf32>
    %83 = tpu.matmul %82, %4, %cst_65 {dimension_numbers = #tpu.dot_dimension_numbers<[1], [0], [0], [1], [0, 0, 1, 1], [], []>} : vector<2x16xbf16>, vector<16x32xbf16>, vector<2x32xf32> -> vector<2x32xf32>
    %84 = arith.addf %80, %83 : vector<2x32xf32>
    %c6 = arith.constant 6 : index
    %c0_66 = arith.constant 0 : index
    %c0_67 = arith.constant 0 : index
    %85 = vector.load %arg1[%c6, %c0_66, %c0_67] : memref<12x2x16xbf16, #tpu.memory_space<vmem>>, vector<1x2x16xbf16>
    %86 = vector.shape_cast %85 : vector<1x2x16xbf16> to vector<2x16xbf16>
    %cst_68 = arith.constant dense<0.000000e+00> : vector<2x32xf32>
    %87 = tpu.matmul %86, %6, %cst_68 {dimension_numbers = #tpu.dot_dimension_numbers<[1], [0], [0], [1], [0, 0, 1, 1], [], []>} : vector<2x16xbf16>, vector<16x32xbf16>, vector<2x32xf32> -> vector<2x32xf32>
    %88 = arith.addf %84, %87 : vector<2x32xf32>
    %89 = vector.broadcast %0 : vector<1x32xf32> to vector<2x32xf32>
    %90 = arith.addf %88, %89 : vector<2x32xf32>
    %91 = math.tanh %90 : vector<2x32xf32>
    %92 = arith.addf %75, %91 : vector<2x32xf32>
    %cst_69 = arith.constant 0.000000e+00 : f32
    %93 = vector.broadcast %cst_69 : f32 to vector<2x32xf32>
    %c5_70 = arith.constant 5 : index
    %c0_71 = arith.constant 0 : index
    %c0_72 = arith.constant 0 : index
    %94 = vector.load %arg1[%c5_70, %c0_71, %c0_72] : memref<12x2x16xbf16, #tpu.memory_space<vmem>>, vector<1x2x16xbf16>
    %95 = vector.shape_cast %94 : vector<1x2x16xbf16> to vector<2x16xbf16>
    %cst_73 = arith.constant dense<0.000000e+00> : vector<2x32xf32>
    %96 = tpu.matmul %95, %2, %cst_73 {dimension_numbers = #tpu.dot_dimension_numbers<[1], [0], [0], [1], [0, 0, 1, 1], [], []>} : vector<2x16xbf16>, vector<16x32xbf16>, vector<2x32xf32> -> vector<2x32xf32>
    %97 = arith.addf %93, %96 : vector<2x32xf32>
    %c6_74 = arith.constant 6 : index
    %c0_75 = arith.constant 0 : index
    %c0_76 = arith.constant 0 : index
    %98 = vector.load %arg1[%c6_74, %c0_75, %c0_76] : memref<12x2x16xbf16, #tpu.memory_space<vmem>>, vector<1x2x16xbf16>
    %99 = vector.shape_cast %98 : vector<1x2x16xbf16> to vector<2x16xbf16>
    %cst_77 = arith.constant dense<0.000000e+00> : vector<2x32xf32>
    %100 = tpu.matmul %99, %4, %cst_77 {dimension_numbers = #tpu.dot_dimension_numbers<[1], [0], [0], [1], [0, 0, 1, 1], [], []>} : vector<2x16xbf16>, vector<16x32xbf16>, vector<2x32xf32> -> vector<2x32xf32>
    %101 = arith.addf %97, %100 : vector<2x32xf32>
    %c7 = arith.constant 7 : index
    %c0_78 = arith.constant 0 : index
    %c0_79 = arith.constant 0 : index
    %102 = vector.load %arg1[%c7, %c0_78, %c0_79] : memref<12x2x16xbf16, #tpu.memory_space<vmem>>, vector<1x2x16xbf16>
    %103 = vector.shape_cast %102 : vector<1x2x16xbf16> to vector<2x16xbf16>
    %cst_80 = arith.constant dense<0.000000e+00> : vector<2x32xf32>
    %104 = tpu.matmul %103, %6, %cst_80 {dimension_numbers = #tpu.dot_dimension_numbers<[1], [0], [0], [1], [0, 0, 1, 1], [], []>} : vector<2x16xbf16>, vector<16x32xbf16>, vector<2x32xf32> -> vector<2x32xf32>
    %105 = arith.addf %101, %104 : vector<2x32xf32>
    %106 = vector.broadcast %0 : vector<1x32xf32> to vector<2x32xf32>
    %107 = arith.addf %105, %106 : vector<2x32xf32>
    %108 = math.tanh %107 : vector<2x32xf32>
    %109 = arith.addf %92, %108 : vector<2x32xf32>
    %cst_81 = arith.constant 0.000000e+00 : f32
    %110 = vector.broadcast %cst_81 : f32 to vector<2x32xf32>
    %c6_82 = arith.constant 6 : index
    %c0_83 = arith.constant 0 : index
    %c0_84 = arith.constant 0 : index
    %111 = vector.load %arg1[%c6_82, %c0_83, %c0_84] : memref<12x2x16xbf16, #tpu.memory_space<vmem>>, vector<1x2x16xbf16>
    %112 = vector.shape_cast %111 : vector<1x2x16xbf16> to vector<2x16xbf16>
    %cst_85 = arith.constant dense<0.000000e+00> : vector<2x32xf32>
    %113 = tpu.matmul %112, %2, %cst_85 {dimension_numbers = #tpu.dot_dimension_numbers<[1], [0], [0], [1], [0, 0, 1, 1], [], []>} : vector<2x16xbf16>, vector<16x32xbf16>, vector<2x32xf32> -> vector<2x32xf32>
    %114 = arith.addf %110, %113 : vector<2x32xf32>
    %c7_86 = arith.constant 7 : index
    %c0_87 = arith.constant 0 : index
    %c0_88 = arith.constant 0 : index
    %115 = vector.load %arg1[%c7_86, %c0_87, %c0_88] : memref<12x2x16xbf16, #tpu.memory_space<vmem>>, vector<1x2x16xbf16>
    %116 = vector.shape_cast %115 : vector<1x2x16xbf16> to vector<2x16xbf16>
    %cst_89 = arith.constant dense<0.000000e+00> : vector<2x32xf32>
    %117 = tpu.matmul %116, %4, %cst_89 {dimension_numbers = #tpu.dot_dimension_numbers<[1], [0], [0], [1], [0, 0, 1, 1], [], []>} : vector<2x16xbf16>, vector<16x32xbf16>, vector<2x32xf32> -> vector<2x32xf32>
    %118 = arith.addf %114, %117 : vector<2x32xf32>
    %c8 = arith.constant 8 : index
    %c0_90 = arith.constant 0 : index
    %c0_91 = arith.constant 0 : index
    %119 = vector.load %arg1[%c8, %c0_90, %c0_91] : memref<12x2x16xbf16, #tpu.memory_space<vmem>>, vector<1x2x16xbf16>
    %120 = vector.shape_cast %119 : vector<1x2x16xbf16> to vector<2x16xbf16>
    %cst_92 = arith.constant dense<0.000000e+00> : vector<2x32xf32>
    %121 = tpu.matmul %120, %6, %cst_92 {dimension_numbers = #tpu.dot_dimension_numbers<[1], [0], [0], [1], [0, 0, 1, 1], [], []>} : vector<2x16xbf16>, vector<16x32xbf16>, vector<2x32xf32> -> vector<2x32xf32>
    %122 = arith.addf %118, %121 : vector<2x32xf32>
    %123 = vector.broadcast %0 : vector<1x32xf32> to vector<2x32xf32>
    %124 = arith.addf %122, %123 : vector<2x32xf32>
    %125 = math.tanh %124 : vector<2x32xf32>
    %126 = arith.addf %109, %125 : vector<2x32xf32>
    %cst_93 = arith.constant 0.000000e+00 : f32
    %127 = vector.broadcast %cst_93 : f32 to vector<2x32xf32>
    %c7_94 = arith.constant 7 : index
    %c0_95 = arith.constant 0 : index
    %c0_96 = arith.constant 0 : index
    %128 = vector.load %arg1[%c7_94, %c0_95, %c0_96] : memref<12x2x16xbf16, #tpu.memory_space<vmem>>, vector<1x2x16xbf16>
    %129 = vector.shape_cast %128 : vector<1x2x16xbf16> to vector<2x16xbf16>
    %cst_97 = arith.constant dense<0.000000e+00> : vector<2x32xf32>
    %130 = tpu.matmul %129, %2, %cst_97 {dimension_numbers = #tpu.dot_dimension_numbers<[1], [0], [0], [1], [0, 0, 1, 1], [], []>} : vector<2x16xbf16>, vector<16x32xbf16>, vector<2x32xf32> -> vector<2x32xf32>
    %131 = arith.addf %127, %130 : vector<2x32xf32>
    %c8_98 = arith.constant 8 : index
    %c0_99 = arith.constant 0 : index
    %c0_100 = arith.constant 0 : index
    %132 = vector.load %arg1[%c8_98, %c0_99, %c0_100] : memref<12x2x16xbf16, #tpu.memory_space<vmem>>, vector<1x2x16xbf16>
    %133 = vector.shape_cast %132 : vector<1x2x16xbf16> to vector<2x16xbf16>
    %cst_101 = arith.constant dense<0.000000e+00> : vector<2x32xf32>
    %134 = tpu.matmul %133, %4, %cst_101 {dimension_numbers = #tpu.dot_dimension_numbers<[1], [0], [0], [1], [0, 0, 1, 1], [], []>} : vector<2x16xbf16>, vector<16x32xbf16>, vector<2x32xf32> -> vector<2x32xf32>
    %135 = arith.addf %131, %134 : vector<2x32xf32>
    %c9 = arith.constant 9 : index
    %c0_102 = arith.constant 0 : index
    %c0_103 = arith.constant 0 : index
    %136 = vector.load %arg1[%c9, %c0_102, %c0_103] : memref<12x2x16xbf16, #tpu.memory_space<vmem>>, vector<1x2x16xbf16>
    %137 = vector.shape_cast %136 : vector<1x2x16xbf16> to vector<2x16xbf16>
    %cst_104 = arith.constant dense<0.000000e+00> : vector<2x32xf32>
    %138 = tpu.matmul %137, %6, %cst_104 {dimension_numbers = #tpu.dot_dimension_numbers<[1], [0], [0], [1], [0, 0, 1, 1], [], []>} : vector<2x16xbf16>, vector<16x32xbf16>, vector<2x32xf32> -> vector<2x32xf32>
    %139 = arith.addf %135, %138 : vector<2x32xf32>
    %140 = vector.broadcast %0 : vector<1x32xf32> to vector<2x32xf32>
    %141 = arith.addf %139, %140 : vector<2x32xf32>
    %142 = math.tanh %141 : vector<2x32xf32>
    %143 = arith.addf %126, %142 : vector<2x32xf32>
    %cst_105 = arith.constant 0.000000e+00 : f32
    %144 = vector.broadcast %cst_105 : f32 to vector<2x32xf32>
    %c8_106 = arith.constant 8 : index
    %c0_107 = arith.constant 0 : index
    %c0_108 = arith.constant 0 : index
    %145 = vector.load %arg1[%c8_106, %c0_107, %c0_108] : memref<12x2x16xbf16, #tpu.memory_space<vmem>>, vector<1x2x16xbf16>
    %146 = vector.shape_cast %145 : vector<1x2x16xbf16> to vector<2x16xbf16>
    %cst_109 = arith.constant dense<0.000000e+00> : vector<2x32xf32>
    %147 = tpu.matmul %146, %2, %cst_109 {dimension_numbers = #tpu.dot_dimension_numbers<[1], [0], [0], [1], [0, 0, 1, 1], [], []>} : vector<2x16xbf16>, vector<16x32xbf16>, vector<2x32xf32> -> vector<2x32xf32>
    %148 = arith.addf %144, %147 : vector<2x32xf32>
    %c9_110 = arith.constant 9 : index
    %c0_111 = arith.constant 0 : index
    %c0_112 = arith.constant 0 : index
    %149 = vector.load %arg1[%c9_110, %c0_111, %c0_112] : memref<12x2x16xbf16, #tpu.memory_space<vmem>>, vector<1x2x16xbf16>
    %150 = vector.shape_cast %149 : vector<1x2x16xbf16> to vector<2x16xbf16>
    %cst_113 = arith.constant dense<0.000000e+00> : vector<2x32xf32>
    %151 = tpu.matmul %150, %4, %cst_113 {dimension_numbers = #tpu.dot_dimension_numbers<[1], [0], [0], [1], [0, 0, 1, 1], [], []>} : vector<2x16xbf16>, vector<16x32xbf16>, vector<2x32xf32> -> vector<2x32xf32>
    %152 = arith.addf %148, %151 : vector<2x32xf32>
    %c10 = arith.constant 10 : index
    %c0_114 = arith.constant 0 : index
    %c0_115 = arith.constant 0 : index
    %153 = vector.load %arg1[%c10, %c0_114, %c0_115] : memref<12x2x16xbf16, #tpu.memory_space<vmem>>, vector<1x2x16xbf16>
    %154 = vector.shape_cast %153 : vector<1x2x16xbf16> to vector<2x16xbf16>
    %cst_116 = arith.constant dense<0.000000e+00> : vector<2x32xf32>
    %155 = tpu.matmul %154, %6, %cst_116 {dimension_numbers = #tpu.dot_dimension_numbers<[1], [0], [0], [1], [0, 0, 1, 1], [], []>} : vector<2x16xbf16>, vector<16x32xbf16>, vector<2x32xf32> -> vector<2x32xf32>
    %156 = arith.addf %152, %155 : vector<2x32xf32>
    %157 = vector.broadcast %0 : vector<1x32xf32> to vector<2x32xf32>
    %158 = arith.addf %156, %157 : vector<2x32xf32>
    %159 = math.tanh %158 : vector<2x32xf32>
    %160 = arith.addf %143, %159 : vector<2x32xf32>
    %cst_117 = arith.constant 0.000000e+00 : f32
    %161 = vector.broadcast %cst_117 : f32 to vector<2x32xf32>
    %c9_118 = arith.constant 9 : index
    %c0_119 = arith.constant 0 : index
    %c0_120 = arith.constant 0 : index
    %162 = vector.load %arg1[%c9_118, %c0_119, %c0_120] : memref<12x2x16xbf16, #tpu.memory_space<vmem>>, vector<1x2x16xbf16>
    %163 = vector.shape_cast %162 : vector<1x2x16xbf16> to vector<2x16xbf16>
    %cst_121 = arith.constant dense<0.000000e+00> : vector<2x32xf32>
    %164 = tpu.matmul %163, %2, %cst_121 {dimension_numbers = #tpu.dot_dimension_numbers<[1], [0], [0], [1], [0, 0, 1, 1], [], []>} : vector<2x16xbf16>, vector<16x32xbf16>, vector<2x32xf32> -> vector<2x32xf32>
    %165 = arith.addf %161, %164 : vector<2x32xf32>
    %c10_122 = arith.constant 10 : index
    %c0_123 = arith.constant 0 : index
    %c0_124 = arith.constant 0 : index
    %166 = vector.load %arg1[%c10_122, %c0_123, %c0_124] : memref<12x2x16xbf16, #tpu.memory_space<vmem>>, vector<1x2x16xbf16>
    %167 = vector.shape_cast %166 : vector<1x2x16xbf16> to vector<2x16xbf16>
    %cst_125 = arith.constant dense<0.000000e+00> : vector<2x32xf32>
    %168 = tpu.matmul %167, %4, %cst_125 {dimension_numbers = #tpu.dot_dimension_numbers<[1], [0], [0], [1], [0, 0, 1, 1], [], []>} : vector<2x16xbf16>, vector<16x32xbf16>, vector<2x32xf32> -> vector<2x32xf32>
    %169 = arith.addf %165, %168 : vector<2x32xf32>
    %c11 = arith.constant 11 : index
    %c0_126 = arith.constant 0 : index
    %c0_127 = arith.constant 0 : index
    %170 = vector.load %arg1[%c11, %c0_126, %c0_127] : memref<12x2x16xbf16, #tpu.memory_space<vmem>>, vector<1x2x16xbf16>
    %171 = vector.shape_cast %170 : vector<1x2x16xbf16> to vector<2x16xbf16>
    %cst_128 = arith.constant dense<0.000000e+00> : vector<2x32xf32>
    %172 = tpu.matmul %171, %6, %cst_128 {dimension_numbers = #tpu.dot_dimension_numbers<[1], [0], [0], [1], [0, 0, 1, 1], [], []>} : vector<2x16xbf16>, vector<16x32xbf16>, vector<2x32xf32> -> vector<2x32xf32>
    %173 = arith.addf %169, %172 : vector<2x32xf32>
    %174 = vector.broadcast %0 : vector<1x32xf32> to vector<2x32xf32>
    %175 = arith.addf %173, %174 : vector<2x32xf32>
    %176 = math.tanh %175 : vector<2x32xf32>
    %177 = arith.addf %160, %176 : vector<2x32xf32>
    %c0_129 = arith.constant 0 : index
    %c0_130 = arith.constant 0 : index
    %178 = vector.load %arg4[%c0_129, %c0_130] : memref<2x1xf32, #tpu.memory_space<vmem>>, vector<2x1xf32>
    %179 = vector.broadcast %178 : vector<2x1xf32> to vector<2x32xf32>
    %180 = arith.mulf %177, %179 : vector<2x32xf32>
    %c0_131 = arith.constant 0 : index
    %c0_132 = arith.constant 0 : index
    %181 = vector.load %arg5[%c0_131, %c0_132] : memref<2x32xf32, #tpu.memory_space<vmem>>, vector<2x32xf32>
    tpu.vector_store %arg5[%c0_131, %c0_132], %180 {strides = array<i32>} : memref<2x32xf32, #tpu.memory_space<vmem>>, vector<2x32xf32>,
    return
  }
  func.func @transform_0(%arg0: i32) -> (i32, i32, i32) {
    %c0_i32 = arith.constant 0 : i32
    %c0_i32_0 = arith.constant 0 : i32
    %c0_i32_1 = arith.constant 0 : i32
    return %c0_i32, %arg0, %c0_i32_0 : i32, i32, i32
  }
  func.func @transform_1(%arg0: i32) -> (i32, i32, i32) {
    %c0_i32 = arith.constant 0 : i32
    %c0_i32_0 = arith.constant 0 : i32
    %c0_i32_1 = arith.constant 0 : i32
    %c0_i32_2 = arith.constant 0 : i32
    return %c0_i32, %c0_i32_0, %c0_i32_1 : i32, i32, i32
  }
  func.func @transform_2(%arg0: i32) -> (i32, i32) {
    %c0_i32 = arith.constant 0 : i32
    %c0_i32_0 = arith.constant 0 : i32
    %c0_i32_1 = arith.constant 0 : i32
    return %c0_i32, %c0_i32_0 : i32, i32
  }
  func.func @transform_3(%arg0: i32) -> (i32, i32) {
    %c0_i32 = arith.constant 0 : i32
    %c0_i32_0 = arith.constant 0 : i32
    return %arg0, %c0_i32 : i32, i32
  }
  func.func @transform_4(%arg0: i32) -> (i32, i32) {
    %c0_i32 = arith.constant 0 : i32
    %c0_i32_0 = arith.constant 0 : i32
    return %arg0, %c0_i32 : i32, i32
  }
}

</mosaic_0001>

<bundles_post_ra>
// kernel: combined_cnn_forward.5
= control target key start
LH: loop header
LB: loop body
LE: loop exit
PB: predicated region body
PF: predicated region fallthrough
CT: control target
= control target key end

     0   :  { %s524_s0 = inlined_call_operand.vmem [shape: s32[2], index: 0, kind: input, shape index: {}]   ;;  %s525_s2 = inlined_call_operand.vmem [shape: f32[2,1,32], index: 2, kind: input, shape index: {}]   ;;  %s526_s3 = inlined_call_operand.vmem [shape: f32[2,1,32], index: 3, kind: input, shape index: {}]   ;;  %s527_s4 = inlined_call_operand.hbm [shape: f32[2,1,32], index: 4, kind: output, shape index: {}]   ;;  %s528_s1 = inlined_call_operand.vmem [shape: s32[2], index: 1, kind: input, shape index: {}]  }
   0x1   :  { %s9_s17 = sshll.u32 %s524_s0, 4  ;;  %s13_s20 = sshll.u32 %s528_s1, 4  ;;  %s10_s17 = int_to_ptr.vmem [resolvable:$true] %s9_s17  ;;  %s14_s20 = int_to_ptr.vmem [resolvable:$true] %s13_s20 }
   0x2   :  { %s312_s21 = scalar_lea.vmem %s10_s17, 16  ;;  %p317_p1 = scmp.lt.s32.totalorder %s10_s17, %s10_s17 }
   0x3   :  { %p313_p0 = scmp.ne.s32.totalorder %s10_s17, %s312_s21  ;;  %p318_p2 = scmp.lt.s32.totalorder %s312_s21, %s312_s21 }
   0x5   :  { %p319_p3 = por %p318_p2, %p317_p1 }
   0x7   :  { %p320_p4 = pnand %p319_p3, %p313_p0 }
   0x9   :  { %323 = shalt.err (!%p320_p4)  }
   0xa   :  { %s400_s22 = smov [#allocation3]   ;;  %s324_s23 = scalar_lea.vmem %s14_s20, 16 }
   0xb   :  { %12 = dma.vmem_to_smem %s10_s17, 16, %s400_s22, [#allocation2] }
   0xc   :  { %p325_p5 = scmp.ne.s32.totalorder %s14_s20, %s324_s23  ;;  %p329_p6 = scmp.lt.s32.totalorder %s14_s20, %s14_s20 }
   0xd   :  { %p330_p7 = scmp.lt.s32.totalorder %s324_s23, %s324_s23 }
   0xf   :  { %p331_p8 = por %p330_p7, %p329_p6 }
  0x11   :  { %p332_p9 = pnand %p331_p8, %p325_p5 }
  0x13   :  { %335 = shalt.err (!%p332_p9)  }
  0x14   :  { %s401_s0 = smov [#allocation4]  }
  0x15   :  { %16 = dma.vmem_to_smem %s14_s20, 16, %s401_s0, [#allocation2] }
  0x16   :  { %378 = dma.done.wait [#allocation2], 32 }
  0x17   :  { %379 = vsyncadd [#allocation2], 4294967264 }
  0x18   :  { %18 = sfence }
  0x19   :  { %19 = vsyncpa [#allocation6], 0 }
  0x1a   :  { %21 = vsyncpa [#allocation6 + $0x1], 0  ;;  %s434_s1 = smov 0   ;;  %s436_s24 = smov 0  }
  0x1b   :  { %s438_s25 = smov 0   ;;  %s440_s26 = smov 0  }
  0x1c LB: > { %s455_s27 = sadd.s32 4294967295, %s398_s26   ;;  %s262_s28 = sadd.s32 4294967294, %s398_s26   ;;  %s398_s26 = sphi %s440_s26, %s534_s26   ;;  %s394_s25 = sphi %s438_s25, %s533_s25   ;;  %s390_s24 = sphi %s436_s24, %s532_s24   ;;  %s386_s1 = sphi %s434_s1, %s531_s1  }
  0x1d   : > { %s459_s29 = sadd.s32 1, %s398_s26   ;;  %s90_s30 = sadd.s32 1, %s394_s25 }
  0x1e   : > { %s87_s5 = ssub.s32 %s398_s26, %s459_s29  ;;  %p100_p10 = scmp.ne.s32.totalorder %s394_s25, %s390_s24 }
  0x1f   : > { %p88_p11 = scmp.eq.s32.totalorder %s87_s5, 0  ;;  %p101_p12 = scmp.eq.s32.totalorder %s455_s27, 1 }
  0x20   : > { %p106_p13 = scmp.ne.s32.totalorder %s390_s24, %s386_s1  ;;  %p107_p0 = scmp.eq.s32.totalorder %s262_s28, 1 }
  0x21   : > { %s470_s6 = scalar_select %p88_p11, %s394_s25, %s90_s30  }
  0x22   : > { %p472_p1 = por %p101_p12, %p100_p10  ;;  %p476_p2 = por %p107_p0, %p106_p13 }
  0x23   : > { %p265_p3 = scmp.ge.s32.totalorder %s398_s26, 1  ;;  %p141_p4 = scmp.lt.s32.totalorder %s398_s26, 3 }
  0x25   : > { %p142_p5 = pnand %p265_p3, %p141_p4 }
  0x26   : > { %s165_s9 = sld [smem:[#allocation3 + %s455_s27]] (!%p142_p5)  ;;  %s163_s17 = sand.u32 (!%p142_p5), 1, %s390_s24  }
  0x27   : > { %145 = sbr.rel (%p142_p5) target bundleno = 226 (0xe2), region = 28  ;;  %s170_s10 = sld [smem:[#allocation4 + %s455_s27]] (!%p142_p5) }
  0x28   : > { %s266_s18 = sshll.u32 (!%p142_p5), %s455_s27, 4  ;;  %s164_s19 = scalar_lea.vmem (!%p142_p5), [#allocation5], %s163_s17 }
  0x29   : > { %s201_s20 = sshll.u32 (!%p142_p5), %s164_s19, 4  ;;  %s199_s23 = scalar_lea.hbm (!%p142_p5), %s527_s4, %s266_s18  ;;  %s202_s20 = int_to_ptr.vmem [resolvable:$true] %s201_s20 }
  0x2a   : > { %s189_s0 = scalar_lea.sflag (!%p142_p5), [#allocation6], %s163_s17  ;;  %s336_s28 = scalar_lea.vmem (!%p142_p5), %s202_s20, 16 }
  0x2b   : > { %p337_p8 = scmp.ne.s32.totalorder (!%p142_p5), %s202_s20, %s336_s28  ;;  %s402_s30 = smov (!%p142_p5), [#allocation5]  }
  0x2c   : > { %p166_p6 = scmp.lt.s32.totalorder %s165_s9, 1  ;;  %vm180_vm0 = vcmask 253952   ;;  %s340_s5 = sshll.u32 %s402_s30, 4  ;;  %s341_s5 = int_to_ptr.vmem [resolvable:$false] %s340_s5 }
  0x2d   : > { %p171_p7 = scmp.lt.s32.totalorder %s170_s10, 1  ;;  %p338_p9 = pnand %p337_p8, %p472_p1 }
  0x2e   : > { %s536_s9 = smov (!%p166_p6, %s165_s9), 1  ;;  %s342_s27 = scalar_lea.vmem %s341_s5, 32 }
  0x2f   : > { %s538_s10 = smov (!%p171_p7, %s170_s10), 1  ;;  %s168_s13 = scalar_lea.vmem %s525_s2, %s536_s9 }
  0x30   : > { %s173_s16 = scalar_lea.vmem %s526_s3, %s538_s10  ;;  %v175_v0 = vld [vmem:[%s168_s13] sm:$0x1]  ;;  %p339_p10 = pneg %p338_p9 }
  0x31   : > { %v176_v1 = vld [vmem:[%s173_s16] sm:$0x1]  ;;  %p343_p11 = scmp.lt.s32.totalorder %s202_s20, %s341_s5  ;;  %p344_p12 = scmp.lt.s32.totalorder %s342_s27, %s336_s28 }
  0x32   : > { %v177_v2 = vadd.f32 %v176_v1, %v175_v0 }
  0x33   : > { %p345_p13 = por %p344_p12, %p343_p11 }
  0x34   : > { %v178_v3 = vmul.f32 0.5, %v177_v2 }
  0x35   : > { %p346_p0 = pnand %p345_p13, %p339_p10 }
  0x36   : > { %v179_v4 = vmul.f32 %v178_v3, %v178_v3 }
  0x38   : > { %v181_v5 = vsel %vm180_vm0, %v179_v4, 0.0 }
  0x39   : > { %182 = vadd.xlane.f32.xlu0 %v181_v5 }
  0xc2   : > { %v183_v6 = vpop.xlane.xlu0 %182 }
  0xc3   : > { %v184_v7 = vmax.f32 %v183_v6, 1e-24 }
  0xc5   : > { %310 = vrsqrt.f32 %v184_v7 }
  0xd2   : > { %v311_v8 = vpop.eup %310 }
  0xd3   : > { %v186_v9 = vmul.f32 %v311_v8, %v178_v3 }
  0xd5   : > { %187 = vst.msk [vmem:[%s164_s19] sm:$0x1] %vm180_vm0, %v186_v9 }
  0xd6   : > { %349 = shalt.err (!%p346_p0)
}
  0xd7   : > { %s350_s9 = scalar_lea.hbm %s199_s23, 16  ;;  %s354_s12 = scalar_lea.hbm %s527_s4, 32 }
  0xd8   : > { %p351_p3 = scmp.ne.s32.totalorder %s199_s23, %s350_s9  ;;  %p355_p6 = scmp.lt.s32.totalorder %s199_s23, %s527_s4 }
  0xd9   : > { %p356_p7 = scmp.lt.s32.totalorder %s354_s12, %s350_s9 }
  0xda   : > { %p352_p4 = pnand %p351_p3, %p472_p1 }
  0xdb   : > { %p357_p8 = por %p356_p7, %p355_p6 }
  0xdc   : > { %p353_p5 = pneg %p352_p4 }
  0xde   : > { %p358_p9 = pnand %p357_p8, %p353_p5 }
  0xe0   : > { %361 = shalt.err (!%p358_p9)
}
  0xe1   : > { %269 = dma.vmem_to_hbm [thread:$0]  (%p472_p1), %s202_s20, 16, %s199_s23, %s189_s0  }
  0xe2 PF: > { %p275_p10 = scmp.ge.s32.totalorder %s398_s26, 2  ;;  %s213_s15 = sand.u32 1, %s386_s1  }
  0xe3   : > { %s214_s16 = scalar_lea.sflag [#allocation6], %s213_s15 }
  0xe4   : > { %p272_p11 = pnand %p275_p10, %p476_p2 }
  0xe6   : > { %p273_p12 = pneg %p272_p11 }
  0xe8   : > { %381 = dma.done.wait (%p273_p12), %s214_s16, 16  }
  0xe9   : > { %383 = vsyncadd (%p273_p12), %s214_s16, 4294967280  ;;  %p24_p13 = scmp.ge.s32.totalorder %s459_s29, 4   ;;  %s531_s1 = smov %s390_s24 }
  0xea   : > { %s532_s24 = smov %s394_s25  ;;  %s533_s25 = smov %s470_s6 }
  0xeb   : > { %s534_s26 = smov %s459_s29  ;;  %26 = sbr.rel (!%p24_p13) target bundleno = 28 (0x1c), region = 66 }
  0xf0   :  { %218 = vsyncpa [#allocation6], 1 }
  0xf1   :  { %220 = vsyncpa [#allocation6 + $0x1], 1 }

// kernel: combined_cnn_forward.3
= control target key start
LH: loop header
LB: loop body
LE: loop exit
PB: predicated region body
PF: predicated region fallthrough
CT: control target
= control target key end

     0   :  { %v1044_v0 = vmov 0.0   ;;  %vm1045_vm0 = vmmov 0   ;;  %vm36_vm1 = vcmask 130048   ;;  %v1046_v4 = vmov 0   ;;  %s1210_s1 = inlined_call_operand.vmem [shape: bf16[3,16,32], index: 1, kind: input, shape index: {}]   ;;  %s1211_s0 = inlined_call_operand.vmem [shape: bf16[8,2,16], index: 0, kind: input, shape index: {}]   ;;  %s1212_s3 = inlined_call_operand.vmem [shape: f32[2,1], index: 3, kind: input, shape index: {}]   ;;  %s1213_s2 = inlined_call_operand.vmem [shape: f32[1,32], index: 2, kind: input, shape index: {}]   ;;  %s1214_s4 = inlined_call_operand.vmem [shape: f32[2,32], index: 4, kind: output, shape index: {}]  }
   0x1   :  { %917 = vmatprep.subr.bf16.mxu0 %v1044_v0  ;;  %923 = vmatprep.subr.bf16.mxu1 %v1044_v0  ;;  %v1077_v1 = vld [vmem:[%s1210_s1 + $0x8] sm:$0xff]   ;;  %v1082_v2 = vld [vmem:[%s1210_s1] sm:$0xff]   ;;  %v1100_v6 = vld [vmem:[%s1210_s1 + $0x10] sm:$0xff]   ;;  %vm842_vm2 = vcmask 254976  }
   0x2   :  { %919 = vmatprep.mubr.msk.bf16.mxu0 %vm1045_vm0, %v1044_v0  ;;  %925 = vmatprep.mubr.msk.bf16.mxu1 %vm1045_vm0, %v1044_v0  ;;  %v852_v3 = vld [vmem:[%s1211_s0 + $0x1] sm:$0x1]  ;;  %v27_v5 = vld [vmem:[%s1211_s0] sm:$0x1]  ;;  %v857_v8 = vld [vmem:[%s1211_s0 + $0x2] sm:$0x1] }
   0x3   :  { %918 = vmatpush3.bf16.msra.mxu0 %v1077_v1  ;;  %1028 = vset.pattern.permute.xlu0 %v1046_v4  ;;  %v835_v7 = vld [vmem:[%s1212_s3] sm:$0x3]  ;;  %v863_v9 = vld [vmem:[%s1211_s0 + $0x3] sm:$0x1]  ;;  %v867_v10 = vld [vmem:[%s1211_s0 + $0x4] sm:$0x1] }
   0x4   :  { %924 = vmatpush3.bf16.msra.mxu1 %v1082_v2  ;;  %929 = vmatprep.subr.bf16.mxu0 %v1044_v0  ;;  %v871_v11 = vld [vmem:[%s1211_s0 + $0x5] sm:$0x1]  ;;  %v875_v12 = vld [vmem:[%s1211_s0 + $0x6] sm:$0x1]  ;;  %v879_v13 = vld [vmem:[%s1211_s0 + $0x7] sm:$0x1] }
   0x5   :  { %935 = vmatprep.subr.bf16.mxu1 %v1044_v0  ;;  %838 = vperm.xlu0 %1028, %v835_v7  }
   0x6   :  { %920 = vmatmul.mubr.msk.bf16.vlgmr.msra.gmra.mxu0 %vm36_vm1, %v852_v3 }
   0x7   :  { %926 = vmatmul.mubr.msk.bf16.vlgmr.msra.gmra.mxu1 %vm36_vm1, %v27_v5  ;;  %930 = vmatpush3.bf16.msra.mxu0 %v1100_v6 }
   0x8   :  { %936 = vmatpush3.bf16.msra.mxu1 %v1077_v1  ;;  %931 = vmatprep.mubr.msk.bf16.mxu0 %vm1045_vm0, %v1044_v0 }
   0x9   :  { %937 = vmatprep.mubr.msk.bf16.mxu1 %vm1045_vm0, %v1044_v0  ;;  %941 = vmatprep.subr.bf16.mxu0 %v1044_v0 }
   0xa   :  { %947 = vmatprep.subr.bf16.mxu1 %v1044_v0 }
   0xe   :  { %932 = vmatmul.mubr.msk.bf16.vlgmr.msra.gmra.mxu0 %vm36_vm1, %v857_v8 }
   0xf   :  { %938 = vmatmul.mubr.msk.bf16.vlgmr.msra.gmra.mxu1 %vm36_vm1, %v857_v8  ;;  %942 = vmatpush3.bf16.msra.mxu0 %v1082_v2 }
  0x10   :  { %948 = vmatpush3.bf16.msra.mxu1 %v1100_v6  ;;  %943 = vmatprep.mubr.msk.bf16.mxu0 %vm1045_vm0, %v1044_v0 }
  0x11   :  { %949 = vmatprep.mubr.msk.bf16.mxu1 %vm1045_vm0, %v1044_v0  ;;  %953 = vmatprep.subr.bf16.mxu0 %v1044_v0 }
  0x12   :  { %959 = vmatprep.subr.bf16.mxu1 %v1044_v0 }
  0x16   :  { %944 = vmatmul.mubr.msk.bf16.vlgmr.msra.gmra.mxu0 %vm36_vm1, %v852_v3 }
  0x17   :  { %950 = vmatmul.mubr.msk.bf16.vlgmr.msra.gmra.mxu1 %vm36_vm1, %v863_v9  ;;  %954 = vmatpush3.bf16.msra.mxu0 %v1077_v1 }
  0x18   :  { %960 = vmatpush3.bf16.msra.mxu1 %v1082_v2  ;;  %955 = vmatprep.mubr.msk.bf16.mxu0 %vm1045_vm0, %v1044_v0 }
  0x19   :  { %961 = vmatprep.mubr.msk.bf16.mxu1 %vm1045_vm0, %v1044_v0  ;;  %965 = vmatprep.subr.bf16.mxu0 %v1044_v0 }
  0x1a   :  { %971 = vmatprep.subr.bf16.mxu1 %v1044_v0 }
  0x1e   :  { %956 = vmatmul.mubr.msk.bf16.vlgmr.msra.gmra.mxu0 %vm36_vm1, %v863_v9 }
  0x1f   :  { %962 = vmatmul.mubr.msk.bf16.vlgmr.msra.gmra.mxu1 %vm36_vm1, %v857_v8  ;;  %966 = vmatpush3.bf16.msra.mxu0 %v1100_v6 }
  0x20   :  { %972 = vmatpush3.bf16.msra.mxu1 %v1077_v1  ;;  %967 = vmatprep.mubr.msk.bf16.mxu0 %vm1045_vm0, %v1044_v0 }
  0x21   :  { %973 = vmatprep.mubr.msk.bf16.mxu1 %vm1045_vm0, %v1044_v0  ;;  %977 = vmatprep.subr.bf16.mxu0 %v1044_v0 }
  0x22   :  { %983 = vmatprep.subr.bf16.mxu1 %v1044_v0 }
  0x26   :  { %968 = vmatmul.mubr.msk.bf16.vlgmr.msra.gmra.mxu0 %vm36_vm1, %v867_v10 }
  0x27   :  { %974 = vmatmul.mubr.msk.bf16.vlgmr.msra.gmra.mxu1 %vm36_vm1, %v867_v10  ;;  %978 = vmatpush3.bf16.msra.mxu0 %v1082_v2 }
  0x28   :  { %984 = vmatpush3.bf16.msra.mxu1 %v1100_v6  ;;  %979 = vmatprep.mubr.msk.bf16.mxu0 %vm1045_vm0, %v1044_v0 }
  0x29   :  { %985 = vmatprep.mubr.msk.bf16.mxu1 %vm1045_vm0, %v1044_v0  ;;  %989 = vmatprep.subr.bf16.mxu0 %v1044_v0 }
  0x2a   :  { %995 = vmatprep.subr.bf16.mxu1 %v1044_v0 }
  0x2e   :  { %980 = vmatmul.mubr.msk.bf16.vlgmr.msra.gmra.mxu0 %vm36_vm1, %v863_v9 }
  0x2f   :  { %986 = vmatmul.mubr.msk.bf16.vlgmr.msra.gmra.mxu1 %vm36_vm1, %v871_v11  ;;  %990 = vmatpush3.bf16.msra.mxu0 %v1077_v1 }
  0x30   :  { %996 = vmatpush3.bf16.msra.mxu1 %v1082_v2  ;;  %991 = vmatprep.mubr.msk.bf16.mxu0 %vm1045_vm0, %v1044_v0 }
  0x31   :  { %997 = vmatprep.mubr.msk.bf16.mxu1 %vm1045_vm0, %v1044_v0  ;;  %1001 = vmatprep.subr.bf16.mxu0 %v1044_v0 }
  0x32   :  { %1007 = vmatprep.subr.bf16.mxu1 %v1044_v0 }
  0x36   :  { %992 = vmatmul.mubr.msk.bf16.vlgmr.msra.gmra.mxu0 %vm36_vm1, %v871_v11 }
  0x37   :  { %998 = vmatmul.mubr.msk.bf16.vlgmr.msra.gmra.mxu1 %vm36_vm1, %v867_v10  ;;  %1002 = vmatpush3.bf16.msra.mxu0 %v1100_v6 }
  0x38   :  { %1008 = vmatpush3.bf16.msra.mxu1 %v1077_v1  ;;  %1003 = vmatprep.mubr.msk.bf16.mxu0 %vm1045_vm0, %v1044_v0 }
  0x39   :  { %1009 = vmatprep.mubr.msk.bf16.mxu1 %vm1045_vm0, %v1044_v0  ;;  %1013 = vmatprep.subr.bf16.mxu0 %v1044_v0 }
  0x3a   :  { %1019 = vmatprep.subr.bf16.mxu1 %v1044_v0 }
  0x3e   :  { %1004 = vmatmul.mubr.msk.bf16.vlgmr.msra.gmra.mxu0 %vm36_vm1, %v875_v12 }
  0x3f   :  { %1010 = vmatmul.mubr.msk.bf16.vlgmr.msra.gmra.mxu1 %vm36_vm1, %v875_v12  ;;  %1014 = vmatpush3.bf16.msra.mxu0 %v1082_v2 }
  0x40   :  { %1020 = vmatpush3.bf16.msra.mxu1 %v1100_v6  ;;  %1015 = vmatprep.mubr.msk.bf16.mxu0 %vm1045_vm0, %v1044_v0 }
  0x41   :  { %1021 = vmatprep.mubr.msk.bf16.mxu1 %vm1045_vm0, %v1044_v0 }
  0x46   :  { %1016 = vmatmul.mubr.msk.bf16.vlgmr.msra.gmra.mxu0 %vm36_vm1, %v871_v11  ;;  %v860_v11 = vld [vmem:[%s1213_s2] ss:$0 sm:$0xff] }
  0x47   :  { %1022 = vmatmul.mubr.msk.bf16.vlgmr.msra.gmra.mxu1 %vm36_vm1, %v879_v13 }
  0xc6   :  { %v74_v14 = vpop.f32.mrf.mxu0 }
  0xc7   :  { %v123_v15 = vpop.f32.mrf.mxu1 }
  0xc8   :  { %v921_v16 = vpop.f32.mrf.mxu0  ;;  %v124_v3 = vadd.f32 %v123_v15, %v74_v14 }
  0xc9   :  { %v927_v17 = vpop.f32.mrf.mxu1 }
  0xca   :  { %v77_v18 = vpop.f32.mrf.mxu0 }
  0xcb   :  { %v126_v19 = vpop.f32.mrf.mxu1 }
  0xcc   :  { %v922_v20 = vpop.f32.mrf.mxu0 }
  0xcd   :  { %v928_v21 = vpop.f32.mrf.mxu1 }
  0xce   :  { %v174_v22 = vpop.f32.mrf.mxu0 }
  0xcf   :  { %v224_v23 = vpop.f32.mrf.mxu1  ;;  %v180_v9 = vadd.f32 %v174_v22, %v124_v3 }
  0xd0   :  { %v933_v24 = vpop.f32.mrf.mxu0 }
  0xd1   :  { %v939_v25 = vpop.f32.mrf.mxu1  ;;  %v187_v21 = vadd.f32 %v860_v11, %v180_v9 }
  0xd2   :  { %v177_v26 = vpop.f32.mrf.mxu0 }
  0xd3   :  { %v227_v27 = vpop.f32.mrf.mxu1 }
  0xd4   :  { %v934_v28 = vpop.f32.mrf.mxu0 }
  0xd5   :  { %v940_v29 = vpop.f32.mrf.mxu1 }
  0xd6   :  { %v264_v30 = vpop.f32.mrf.mxu0 }
  0xd7   :  { %v309_v31 = vpop.f32.mrf.mxu1  ;;  %v265_v63 = vadd.f32 %v264_v30, %v224_v23 }
  0xd8   :  { %v945_v32 = vpop.f32.mrf.mxu0 }
  0xd9   :  { %v951_v33 = vpop.f32.mrf.mxu1  ;;  %v315_v5 = vadd.f32 %v309_v31, %v265_v63 }
  0xda   :  { %v267_v34 = vpop.f32.mrf.mxu0 }
  0xdb   :  { %v312_v35 = vpop.f32.mrf.mxu1  ;;  %v316_v17 = vadd.f32 %v860_v11, %v315_v5 }
  0xdc   :  { %v946_v36 = vpop.f32.mrf.mxu0 }
  0xdd   :  { %v952_v37 = vpop.f32.mrf.mxu1  ;;  %1032 = vtanh.f32 %v316_v17 }
  0xde   :  { %v353_v38 = vpop.f32.mrf.mxu0  ;;  %1034 = vtanh.f32 %v187_v21 }
  0xdf   :  { %v393_v39 = vpop.f32.mrf.mxu1 }
  0xe0   :  { %v957_v40 = vpop.f32.mrf.mxu0  ;;  %v394_v6 = vadd.f32 %v393_v39, %v353_v38 }
  0xe1   :  { %v963_v41 = vpop.f32.mrf.mxu1 }
  0xe2   :  { %v356_v42 = vpop.f32.mrf.mxu0 }
  0xe3   :  { %v396_v43 = vpop.f32.mrf.mxu1 }
  0xe4   :  { %v958_v44 = vpop.f32.mrf.mxu0 }
  0xe5   :  { %v964_v45 = vpop.f32.mrf.mxu1 }
  0xe6   :  { %v438_v46 = vpop.f32.mrf.mxu0 }
  0xe7   :  { %v482_v47 = vpop.f32.mrf.mxu1  ;;  %v444_v12 = vadd.f32 %v438_v46, %v394_v6 }
  0xe8   :  { %v969_v48 = vpop.f32.mrf.mxu0 }
  0xe9   :  { %v975_v49 = vpop.f32.mrf.mxu1  ;;  %v445_v15 = vadd.f32 %v860_v11, %v444_v12 }
  0xea   :  { %v441_v50 = vpop.f32.mrf.mxu0  ;;  %v1033_v41 = vpop.eup %1032 }
  0xeb   :  { %v485_v51 = vpop.f32.mrf.mxu1  ;;  %1036 = vtanh.f32 %v445_v15  ;;  %v1035_v42 = vpop.eup %1034 }
  0xec   :  { %v970_v52 = vpop.f32.mrf.mxu0  ;;  %v318_v44 = vadd.f32 %v1035_v42, %v1033_v41  ;;  %v839_v51 = vpop.permute.xlu0 %838 }
  0xed   :  { %v976_v53 = vpop.f32.mrf.mxu1 }
  0xee   :  { %v522_v54 = vpop.f32.mrf.mxu0 }
  0xef   :  { %v567_v55 = vpop.f32.mrf.mxu1  ;;  %v523_v7 = vadd.f32 %v522_v54, %v482_v47 }
  0xf0   :  { %v981_v56 = vpop.f32.mrf.mxu0 }
  0xf1   :  { %v987_v57 = vpop.f32.mrf.mxu1  ;;  %v573_v18 = vadd.f32 %v567_v55, %v523_v7 }
  0xf2   :  { %v525_v58 = vpop.f32.mrf.mxu0 }
  0xf3   :  { %v570_v59 = vpop.f32.mrf.mxu1  ;;  %v574_v22 = vadd.f32 %v860_v11, %v573_v18 }
  0xf4   :  { %v982_v60 = vpop.f32.mrf.mxu0 }
  0xf5   :  { %v988_v61 = vpop.f32.mrf.mxu1  ;;  %1038 = vtanh.f32 %v574_v22 }
  0xf6   :  { %v611_v62 = vpop.f32.mrf.mxu0 }
  0xf7   :  { %v651_v0 = vpop.f32.mrf.mxu1 }
  0xf8   :  { %v993_v1 = vpop.f32.mrf.mxu0  ;;  %v652_v19 = vadd.f32 %v651_v0, %v611_v62  ;;  %v1037_v43 = vpop.eup %1036 }
  0xf9   :  { %v999_v2 = vpop.f32.mrf.mxu1  ;;  %v447_v46 = vadd.f32 %v1037_v43, %v318_v44 }
  0xfa   :  { %v614_v4 = vpop.f32.mrf.mxu0 }
  0xfb   :  { %v654_v8 = vpop.f32.mrf.mxu1 }
  0xfc   :  { %v994_v10 = vpop.f32.mrf.mxu0 }
  0xfd   :  { %v1000_v13 = vpop.f32.mrf.mxu1 }
  0xfe   :  { %v696_v16 = vpop.f32.mrf.mxu0 }
  0xff   :  { %v740_v20 = vpop.f32.mrf.mxu1  ;;  %v702_v23 = vadd.f32 %v696_v16, %v652_v19 }
 0x100   :  { %v1005_v14 = vpop.f32.mrf.mxu0 }
 0x101   :  { %v1011_v24 = vpop.f32.mrf.mxu1  ;;  %v703_v28 = vadd.f32 %v860_v11, %v702_v23 }
 0x102   :  { %v699_v25 = vpop.f32.mrf.mxu0  ;;  %v1039_v45 = vpop.eup %1038 }
 0x103   :  { %v743_v26 = vpop.f32.mrf.mxu1  ;;  %1040 = vtanh.f32 %v703_v28  ;;  %v576_v48 = vadd.f32 %v1039_v45, %v447_v46 }
 0x104   :  { %v1006_v27 = vpop.f32.mrf.mxu0 }
 0x105   :  { %v1012_v29 = vpop.f32.mrf.mxu1 }
 0x106   :  { %v780_v30 = vpop.f32.mrf.mxu0 }
 0x107   :  { %v781_v31 = vadd.f32 %v780_v30, %v740_v20  ;;  %v825_v32 = vpop.f32.mrf.mxu1 }
 0x108   :  { %v1017_v33 = vpop.f32.mrf.mxu0 }
 0x109   :  { %v831_v34 = vadd.f32 %v825_v32, %v781_v31  ;;  %v1023_v35 = vpop.f32.mrf.mxu1 }
 0x10a   :  { %v783_v36 = vpop.f32.mrf.mxu0 }
 0x10b   :  { %v832_v37 = vadd.f32 %v860_v11, %v831_v34  ;;  %v828_v38 = vpop.f32.mrf.mxu1 }
 0x10c   :  { %v1018_v39 = vpop.f32.mrf.mxu0 }
 0x10d   :  { %1042 = vtanh.f32 %v832_v37  ;;  %v1024_v40 = vpop.f32.mrf.mxu1 }
 0x110   :  { %v1041_v47 = vpop.eup %1040 }
 0x111   :  { %v705_v49 = vadd.f32 %v1041_v47, %v576_v48 }
 0x11a   :  { %v1043_v50 = vpop.eup %1042 }
 0x11b   :  { %v834_v52 = vadd.f32 %v1043_v50, %v705_v49 }
 0x11d   :  { %v841_v53 = vmul.f32 %v839_v51, %v834_v52 }
 0x11f   :  { %843 = vst.msk [vmem:[%s1214_s4] sm:$0x3] %vm842_vm2, %v841_v53 }

// kernel: combined_cnn_forward.4
= control target key start
LH: loop header
LB: loop body
LE: loop exit
PB: predicated region body
PF: predicated region fallthrough
CT: control target
= control target key end

     0   :  { %v1680_v0 = vmov 0.0   ;;  %vm1681_vm0 = vmmov 0   ;;  %vm36_vm1 = vcmask 130048   ;;  %v1682_v13 = vmov 0   ;;  %s1933_s1 = inlined_call_operand.vmem [shape: bf16[3,16,32], index: 1, kind: input, shape index: {}]   ;;  %s1934_s0 = inlined_call_operand.vmem [shape: bf16[12,2,16], index: 0, kind: input, shape index: {}]   ;;  %s1935_s3 = inlined_call_operand.vmem [shape: f32[2,1], index: 3, kind: input, shape index: {}]   ;;  %s1936_s2 = inlined_call_operand.vmem [shape: f32[1,32], index: 2, kind: input, shape index: {}]   ;;  %s1937_s4 = inlined_call_operand.vmem [shape: f32[2,32], index: 4, kind: output, shape index: {}]  }
   0x1   :  { %1473 = vmatprep.subr.bf16.mxu0 %v1680_v0  ;;  %1479 = vmatprep.subr.bf16.mxu1 %v1680_v0  ;;  %v1713_v1 = vld [vmem:[%s1933_s1 + $0x8] sm:$0xff]   ;;  %v1718_v2 = vld [vmem:[%s1933_s1] sm:$0xff]   ;;  %v1736_v5 = vld [vmem:[%s1933_s1 + $0x10] sm:$0xff]   ;;  %vm1358_vm2 = vcmask 254976  }
   0x2   :  { %1475 = vmatprep.mubr.msk.bf16.mxu0 %vm1681_vm0, %v1680_v0  ;;  %1481 = vmatprep.mubr.msk.bf16.mxu1 %vm1681_vm0, %v1680_v0  ;;  %v1368_v3 = vld [vmem:[%s1934_s0 + $0x1] sm:$0x1]  ;;  %v27_v4 = vld [vmem:[%s1934_s0] sm:$0x1]  ;;  %v1373_v6 = vld [vmem:[%s1934_s0 + $0x2] sm:$0x1] }
   0x3   :  { %1474 = vmatpush3.bf16.msra.mxu0 %v1713_v1  ;;  %1480 = vmatpush3.bf16.msra.mxu1 %v1718_v2  ;;  %v1379_v7 = vld [vmem:[%s1934_s0 + $0x3] sm:$0x1]  ;;  %v1383_v8 = vld [vmem:[%s1934_s0 + $0x4] sm:$0x1]  ;;  %v1387_v9 = vld [vmem:[%s1934_s0 + $0x5] sm:$0x1] }
   0x4   :  { %1485 = vmatprep.subr.bf16.mxu0 %v1680_v0  ;;  %1491 = vmatprep.subr.bf16.mxu1 %v1680_v0  ;;  %v1391_v10 = vld [vmem:[%s1934_s0 + $0x6] sm:$0x1]  ;;  %v1395_v11 = vld [vmem:[%s1934_s0 + $0x7] sm:$0x1]  ;;  %v1351_v12 = vld [vmem:[%s1935_s3] sm:$0x3] }
   0x5   :  { %1656 = vset.pattern.permute.xlu0 %v1682_v13  ;;  %v1399_v14 = vld [vmem:[%s1934_s0 + $0x8] sm:$0x1]  ;;  %v1403_v15 = vld [vmem:[%s1934_s0 + $0x9] sm:$0x1]  ;;  %v1407_v16 = vld [vmem:[%s1934_s0 + $0xa] sm:$0x1] }
   0x6   :  { %1476 = vmatmul.mubr.msk.bf16.vlgmr.msra.gmra.mxu0 %vm36_vm1, %v1368_v3  ;;  %1482 = vmatmul.mubr.msk.bf16.vlgmr.msra.gmra.mxu1 %vm36_vm1, %v27_v4  ;;  %v1411_v17 = vld [vmem:[%s1934_s0 + $0xb] sm:$0x1]  ;;  %v1915_v35 = vld [vmem:[%s1936_s2] ss:$0 sm:$0xff] }
   0x7   :  { %1486 = vmatpush3.bf16.msra.mxu0 %v1736_v5  ;;  %1492 = vmatpush3.bf16.msra.mxu1 %v1713_v1 }
   0x8   :  { %1487 = vmatprep.mubr.msk.bf16.mxu0 %vm1681_vm0, %v1680_v0  ;;  %1493 = vmatprep.mubr.msk.bf16.mxu1 %vm1681_vm0, %v1680_v0 }
   0x9   :  { %1497 = vmatprep.subr.bf16.mxu0 %v1680_v0  ;;  %1503 = vmatprep.subr.bf16.mxu1 %v1680_v0 }
   0xa   :  { %1354 = vperm.xlu0 %1656, %v1351_v12  }
   0xe   :  { %1488 = vmatmul.mubr.msk.bf16.vlgmr.msra.gmra.mxu0 %vm36_vm1, %v1373_v6  ;;  %1494 = vmatmul.mubr.msk.bf16.vlgmr.msra.gmra.mxu1 %vm36_vm1, %v1373_v6 }
   0xf   :  { %1498 = vmatpush3.bf16.msra.mxu0 %v1718_v2  ;;  %1504 = vmatpush3.bf16.msra.mxu1 %v1736_v5 }
  0x10   :  { %1499 = vmatprep.mubr.msk.bf16.mxu0 %vm1681_vm0, %v1680_v0  ;;  %1505 = vmatprep.mubr.msk.bf16.mxu1 %vm1681_vm0, %v1680_v0 }
  0x11   :  { %1509 = vmatprep.subr.bf16.mxu0 %v1680_v0  ;;  %1515 = vmatprep.subr.bf16.mxu1 %v1680_v0 }
  0x16   :  { %1500 = vmatmul.mubr.msk.bf16.vlgmr.msra.gmra.mxu0 %vm36_vm1, %v1368_v3  ;;  %1506 = vmatmul.mubr.msk.bf16.vlgmr.msra.gmra.mxu1 %vm36_vm1, %v1379_v7 }
  0x17   :  { %1510 = vmatpush3.bf16.msra.mxu0 %v1713_v1  ;;  %1516 = vmatpush3.bf16.msra.mxu1 %v1718_v2 }
  0x18   :  { %1511 = vmatprep.mubr.msk.bf16.mxu0 %vm1681_vm0, %v1680_v0  ;;  %1517 = vmatprep.mubr.msk.bf16.mxu1 %vm1681_vm0, %v1680_v0 }
  0x19   :  { %1521 = vmatprep.subr.bf16.mxu0 %v1680_v0  ;;  %1527 = vmatprep.subr.bf16.mxu1 %v1680_v0 }
  0x1e   :  { %1512 = vmatmul.mubr.msk.bf16.vlgmr.msra.gmra.mxu0 %vm36_vm1, %v1379_v7  ;;  %1518 = vmatmul.mubr.msk.bf16.vlgmr.msra.gmra.mxu1 %vm36_vm1, %v1373_v6 }
  0x1f   :  { %1522 = vmatpush3.bf16.msra.mxu0 %v1736_v5  ;;  %1528 = vmatpush3.bf16.msra.mxu1 %v1713_v1 }
  0x20   :  { %1523 = vmatprep.mubr.msk.bf16.mxu0 %vm1681_vm0, %v1680_v0  ;;  %1529 = vmatprep.mubr.msk.bf16.mxu1 %vm1681_vm0, %v1680_v0 }
  0x21   :  { %1533 = vmatprep.subr.bf16.mxu0 %v1680_v0  ;;  %1539 = vmatprep.subr.bf16.mxu1 %v1680_v0 }
  0x26   :  { %1524 = vmatmul.mubr.msk.bf16.vlgmr.msra.gmra.mxu0 %vm36_vm1, %v1383_v8  ;;  %1530 = vmatmul.mubr.msk.bf16.vlgmr.msra.gmra.mxu1 %vm36_vm1, %v1383_v8 }
  0x27   :  { %1534 = vmatpush3.bf16.msra.mxu0 %v1718_v2  ;;  %1540 = vmatpush3.bf16.msra.mxu1 %v1736_v5 }
  0x28   :  { %1535 = vmatprep.mubr.msk.bf16.mxu0 %vm1681_vm0, %v1680_v0  ;;  %1541 = vmatprep.mubr.msk.bf16.mxu1 %vm1681_vm0, %v1680_v0 }
  0x29   :  { %1545 = vmatprep.subr.bf16.mxu0 %v1680_v0  ;;  %1551 = vmatprep.subr.bf16.mxu1 %v1680_v0 }
  0x2e   :  { %1536 = vmatmul.mubr.msk.bf16.vlgmr.msra.gmra.mxu0 %vm36_vm1, %v1379_v7  ;;  %1542 = vmatmul.mubr.msk.bf16.vlgmr.msra.gmra.mxu1 %vm36_vm1, %v1387_v9 }
  0x2f   :  { %1546 = vmatpush3.bf16.msra.mxu0 %v1713_v1  ;;  %1552 = vmatpush3.bf16.msra.mxu1 %v1718_v2 }
  0x30   :  { %1547 = vmatprep.mubr.msk.bf16.mxu0 %vm1681_vm0, %v1680_v0  ;;  %1553 = vmatprep.mubr.msk.bf16.mxu1 %vm1681_vm0, %v1680_v0 }
  0x31   :  { %1557 = vmatprep.subr.bf16.mxu0 %v1680_v0  ;;  %1563 = vmatprep.subr.bf16.mxu1 %v1680_v0 }
  0x36   :  { %1548 = vmatmul.mubr.msk.bf16.vlgmr.msra.gmra.mxu0 %vm36_vm1, %v1387_v9  ;;  %1554 = vmatmul.mubr.msk.bf16.vlgmr.msra.gmra.mxu1 %vm36_vm1, %v1383_v8 }
  0x37   :  { %1558 = vmatpush3.bf16.msra.mxu0 %v1736_v5  ;;  %1564 = vmatpush3.bf16.msra.mxu1 %v1713_v1 }
  0x38   :  { %1559 = vmatprep.mubr.msk.bf16.mxu0 %vm1681_vm0, %v1680_v0  ;;  %1565 = vmatprep.mubr.msk.bf16.mxu1 %vm1681_vm0, %v1680_v0 }
  0x39   :  { %1569 = vmatprep.subr.bf16.mxu0 %v1680_v0  ;;  %1575 = vmatprep.subr.bf16.mxu1 %v1680_v0 }
  0x3e   :  { %1560 = vmatmul.mubr.msk.bf16.vlgmr.msra.gmra.mxu0 %vm36_vm1, %v1391_v10  ;;  %1566 = vmatmul.mubr.msk.bf16.vlgmr.msra.gmra.mxu1 %vm36_vm1, %v1391_v10 }
  0x3f   :  { %1570 = vmatpush3.bf16.msra.mxu0 %v1718_v2  ;;  %1576 = vmatpush3.bf16.msra.mxu1 %v1736_v5 }
  0x40   :  { %1571 = vmatprep.mubr.msk.bf16.mxu0 %vm1681_vm0, %v1680_v0  ;;  %1577 = vmatprep.mubr.msk.bf16.mxu1 %vm1681_vm0, %v1680_v0 }
  0x41   :  { %1581 = vmatprep.subr.bf16.mxu0 %v1680_v0  ;;  %1587 = vmatprep.subr.bf16.mxu1 %v1680_v0 }
  0x46   :  { %1572 = vmatmul.mubr.msk.bf16.vlgmr.msra.gmra.mxu0 %vm36_vm1, %v1387_v9  ;;  %1578 = vmatmul.mubr.msk.bf16.vlgmr.msra.gmra.mxu1 %vm36_vm1, %v1395_v11 }
  0x47   :  { %1582 = vmatpush3.bf16.msra.mxu0 %v1713_v1  ;;  %1588 = vmatpush3.bf16.msra.mxu1 %v1718_v2 }
  0x48   :  { %1583 = vmatprep.mubr.msk.bf16.mxu0 %vm1681_vm0, %v1680_v0  ;;  %1589 = vmatprep.mubr.msk.bf16.mxu1 %vm1681_vm0, %v1680_v0 }
  0x49   :  { %1593 = vmatprep.subr.bf16.mxu0 %v1680_v0  ;;  %1599 = vmatprep.subr.bf16.mxu1 %v1680_v0 }
  0x4e   :  { %1584 = vmatmul.mubr.msk.bf16.vlgmr.msra.gmra.mxu0 %vm36_vm1, %v1395_v11  ;;  %1590 = vmatmul.mubr.msk.bf16.vlgmr.msra.gmra.mxu1 %vm36_vm1, %v1391_v10 }
  0x4f   :  { %1594 = vmatpush3.bf16.msra.mxu0 %v1736_v5  ;;  %1600 = vmatpush3.bf16.msra.mxu1 %v1713_v1 }
  0x50   :  { %1595 = vmatprep.mubr.msk.bf16.mxu0 %vm1681_vm0, %v1680_v0  ;;  %1601 = vmatprep.mubr.msk.bf16.mxu1 %vm1681_vm0, %v1680_v0 }
  0x51   :  { %1605 = vmatprep.subr.bf16.mxu0 %v1680_v0  ;;  %1611 = vmatprep.subr.bf16.mxu1 %v1680_v0 }
  0x56   :  { %1596 = vmatmul.mubr.msk.bf16.vlgmr.msra.gmra.mxu0 %vm36_vm1, %v1399_v14  ;;  %1602 = vmatmul.mubr.msk.bf16.vlgmr.msra.gmra.mxu1 %vm36_vm1, %v1399_v14 }
  0x57   :  { %1606 = vmatpush3.bf16.msra.mxu0 %v1718_v2  ;;  %1612 = vmatpush3.bf16.msra.mxu1 %v1736_v5 }
  0x58   :  { %1607 = vmatprep.mubr.msk.bf16.mxu0 %vm1681_vm0, %v1680_v0  ;;  %1613 = vmatprep.mubr.msk.bf16.mxu1 %vm1681_vm0, %v1680_v0 }
  0x59   :  { %1617 = vmatprep.subr.bf16.mxu0 %v1680_v0  ;;  %1623 = vmatprep.subr.bf16.mxu1 %v1680_v0 }
  0x5e   :  { %1608 = vmatmul.mubr.msk.bf16.vlgmr.msra.gmra.mxu0 %vm36_vm1, %v1395_v11  ;;  %1614 = vmatmul.mubr.msk.bf16.vlgmr.msra.gmra.mxu1 %vm36_vm1, %v1403_v15 }
  0x5f   :  { %1618 = vmatpush3.bf16.msra.mxu0 %v1713_v1  ;;  %1624 = vmatpush3.bf16.msra.mxu1 %v1718_v2 }
  0x60   :  { %1619 = vmatprep.mubr.msk.bf16.mxu0 %vm1681_vm0, %v1680_v0  ;;  %1625 = vmatprep.mubr.msk.bf16.mxu1 %vm1681_vm0, %v1680_v0 }
  0x61   :  { %1629 = vmatprep.subr.bf16.mxu0 %v1680_v0  ;;  %1635 = vmatprep.subr.bf16.mxu1 %v1680_v0 }
  0x66   :  { %1620 = vmatmul.mubr.msk.bf16.vlgmr.msra.gmra.mxu0 %vm36_vm1, %v1403_v15  ;;  %1626 = vmatmul.mubr.msk.bf16.vlgmr.msra.gmra.mxu1 %vm36_vm1, %v1399_v14 }
  0x67   :  { %1630 = vmatpush3.bf16.msra.mxu0 %v1736_v5  ;;  %1636 = vmatpush3.bf16.msra.mxu1 %v1713_v1 }
  0x68   :  { %1631 = vmatprep.mubr.msk.bf16.mxu0 %vm1681_vm0, %v1680_v0  ;;  %1637 = vmatprep.mubr.msk.bf16.mxu1 %vm1681_vm0, %v1680_v0 }
  0x69   :  { %1641 = vmatprep.subr.bf16.mxu0 %v1680_v0  ;;  %1647 = vmatprep.subr.bf16.mxu1 %v1680_v0 }
  0x6e   :  { %1632 = vmatmul.mubr.msk.bf16.vlgmr.msra.gmra.mxu0 %vm36_vm1, %v1407_v16  ;;  %1638 = vmatmul.mubr.msk.bf16.vlgmr.msra.gmra.mxu1 %vm36_vm1, %v1407_v16 }
  0x6f   :  { %1642 = vmatpush3.bf16.msra.mxu0 %v1718_v2  ;;  %1648 = vmatpush3.bf16.msra.mxu1 %v1736_v5 }
  0x70   :  { %1643 = vmatprep.mubr.msk.bf16.mxu0 %vm1681_vm0, %v1680_v0  ;;  %1649 = vmatprep.mubr.msk.bf16.mxu1 %vm1681_vm0, %v1680_v0 }
  0x76   :  { %1644 = vmatmul.mubr.msk.bf16.vlgmr.msra.gmra.mxu0 %vm36_vm1, %v1403_v15  ;;  %1650 = vmatmul.mubr.msk.bf16.vlgmr.msra.gmra.mxu1 %vm36_vm1, %v1411_v17 }
  0xc6   :  { %v74_v18 = vpop.f32.mrf.mxu0  ;;  %v123_v19 = vpop.f32.mrf.mxu1 }
  0xc7   :  { %v124_v20 = vadd.f32 %v123_v19, %v74_v18 }
  0xc8   :  { %v1477_v21 = vpop.f32.mrf.mxu0  ;;  %v1483_v22 = vpop.f32.mrf.mxu1 }
  0xca   :  { %v77_v23 = vpop.f32.mrf.mxu0  ;;  %v126_v24 = vpop.f32.mrf.mxu1 }
  0xcc   :  { %v1478_v25 = vpop.f32.mrf.mxu0  ;;  %v1484_v26 = vpop.f32.mrf.mxu1 }
  0xce   :  { %v174_v27 = vpop.f32.mrf.mxu0  ;;  %v224_v29 = vpop.f32.mrf.mxu1 }
  0xcf   :  { %v180_v28 = vadd.f32 %v174_v27, %v124_v20 }
  0xd0   :  { %v1489_v30 = vpop.f32.mrf.mxu0  ;;  %v1495_v31 = vpop.f32.mrf.mxu1 }
  0xd1   :  { %v187_v40 = vadd.f32 %v1915_v35, %v180_v28 }
  0xd2   :  { %v177_v32 = vpop.f32.mrf.mxu0  ;;  %v227_v33 = vpop.f32.mrf.mxu1 }
  0xd3   :  { %1660 = vtanh.f32 %v187_v40 }
  0xd4   :  { %v1490_v34 = vpop.f32.mrf.mxu0  ;;  %v1496_v36 = vpop.f32.mrf.mxu1 }
  0xd6   :  { %v264_v37 = vpop.f32.mrf.mxu0  ;;  %v309_v39 = vpop.f32.mrf.mxu1 }
  0xd7   :  { %v265_v38 = vadd.f32 %v264_v37, %v224_v29 }
  0xd8   :  { %v1501_v41 = vpop.f32.mrf.mxu0  ;;  %v1507_v43 = vpop.f32.mrf.mxu1 }
  0xd9   :  { %v315_v42 = vadd.f32 %v309_v39, %v265_v38 }
  0xda   :  { %v267_v44 = vpop.f32.mrf.mxu0  ;;  %v312_v46 = vpop.f32.mrf.mxu1 }
  0xdb   :  { %v316_v45 = vadd.f32 %v1915_v35, %v315_v42 }
  0xdc   :  { %v1502_v47 = vpop.f32.mrf.mxu0  ;;  %v1508_v48 = vpop.f32.mrf.mxu1 }
  0xdd   :  { %1662 = vtanh.f32 %v316_v45 }
  0xde   :  { %v353_v49 = vpop.f32.mrf.mxu0  ;;  %v393_v50 = vpop.f32.mrf.mxu1 }
  0xdf   :  { %v394_v51 = vadd.f32 %v393_v50, %v353_v49 }
  0xe0   :  { %v1513_v52 = vpop.f32.mrf.mxu0  ;;  %v1519_v53 = vpop.f32.mrf.mxu1 }
  0xe1   :  { %v1661_v62 = vpop.eup %1660 }
  0xe2   :  { %v356_v54 = vpop.f32.mrf.mxu0  ;;  %v396_v55 = vpop.f32.mrf.mxu1 }
  0xe4   :  { %v1514_v56 = vpop.f32.mrf.mxu0  ;;  %v1520_v57 = vpop.f32.mrf.mxu1 }
  0xe6   :  { %v438_v58 = vpop.f32.mrf.mxu0  ;;  %v482_v60 = vpop.f32.mrf.mxu1 }
  0xe7   :  { %v444_v59 = vadd.f32 %v438_v58, %v394_v51 }
  0xe8   :  { %v1525_v61 = vpop.f32.mrf.mxu0  ;;  %v1531_v0 = vpop.f32.mrf.mxu1 }
  0xe9   :  { %v445_v63 = vadd.f32 %v1915_v35, %v444_v59 }
  0xea   :  { %v1663_v1 = vpop.eup %1662  ;;  %v441_v2 = vpop.f32.mrf.mxu0 }
  0xeb   :  { %v318_v3 = vadd.f32 %v1663_v1, %v1661_v62  ;;  %1664 = vtanh.f32 %v445_v63  ;;  %v485_v4 = vpop.f32.mrf.mxu1 }
  0xec   :  { %v1526_v5 = vpop.f32.mrf.mxu0 }
  0xed   :  { %v1532_v6 = vpop.f32.mrf.mxu1 }
  0xee   :  { %v522_v7 = vpop.f32.mrf.mxu0 }
  0xef   :  { %v523_v8 = vadd.f32 %v522_v7, %v482_v60  ;;  %v567_v9 = vpop.f32.mrf.mxu1 }
  0xf0   :  { %v1537_v10 = vpop.f32.mrf.mxu0 }
  0xf1   :  { %v573_v11 = vadd.f32 %v567_v9, %v523_v8  ;;  %v1543_v12 = vpop.f32.mrf.mxu1 }
  0xf2   :  { %v525_v13 = vpop.f32.mrf.mxu0 }
  0xf3   :  { %v574_v14 = vadd.f32 %v1915_v35, %v573_v11  ;;  %v570_v15 = vpop.f32.mrf.mxu1 }
  0xf4   :  { %v1538_v16 = vpop.f32.mrf.mxu0 }
  0xf5   :  { %1666 = vtanh.f32 %v574_v14  ;;  %v1544_v17 = vpop.f32.mrf.mxu1 }
  0xf6   :  { %v611_v18 = vpop.f32.mrf.mxu0 }
  0xf7   :  { %v651_v19 = vpop.f32.mrf.mxu1 }
  0xf8   :  { %v1665_v20 = vpop.eup %1664  ;;  %v1549_v21 = vpop.f32.mrf.mxu0  ;;  %v652_v8 = vadd.f32 %v651_v19, %v611_v18 }
  0xf9   :  { %v1555_v22 = vpop.f32.mrf.mxu1  ;;  %v447_v23 = vadd.f32 %v1665_v20, %v318_v3 }
  0xfa   :  { %v614_v24 = vpop.f32.mrf.mxu0 }
  0xfb   :  { %v654_v25 = vpop.f32.mrf.mxu1 }
  0xfc   :  { %v1550_v26 = vpop.f32.mrf.mxu0 }
  0xfd   :  { %v1556_v27 = vpop.f32.mrf.mxu1 }
  0xfe   :  { %v696_v28 = vpop.f32.mrf.mxu0 }
  0xff   :  { %v740_v29 = vpop.f32.mrf.mxu1  ;;  %v702_v12 = vadd.f32 %v696_v28, %v652_v8 }
 0x100   :  { %v1561_v30 = vpop.f32.mrf.mxu0 }
 0x101   :  { %v1567_v31 = vpop.f32.mrf.mxu1  ;;  %v703_v22 = vadd.f32 %v1915_v35, %v702_v12 }
 0x102   :  { %v1667_v32 = vpop.eup %1666  ;;  %v699_v33 = vpop.f32.mrf.mxu0 }
 0x103   :  { %v743_v34 = vpop.f32.mrf.mxu1  ;;  %v1921_v36 = vadd.f32 %v1667_v32, %v447_v23  ;;  %1668 = vtanh.f32 %v703_v22 }
 0x104   :  { %v1562_v37 = vpop.f32.mrf.mxu0 }
 0x105   :  { %v1568_v38 = vpop.f32.mrf.mxu1 }
 0x106   :  { %v780_v39 = vpop.f32.mrf.mxu0 }
 0x107   :  { %v825_v40 = vpop.f32.mrf.mxu1  ;;  %v781_v9 = vadd.f32 %v780_v39, %v740_v29 }
 0x108   :  { %v1573_v41 = vpop.f32.mrf.mxu0 }
 0x109   :  { %v1579_v42 = vpop.f32.mrf.mxu1  ;;  %v831_v15 = vadd.f32 %v825_v40, %v781_v9 }
 0x10a   :  { %v783_v43 = vpop.f32.mrf.mxu0 }
 0x10b   :  { %v828_v44 = vpop.f32.mrf.mxu1  ;;  %v832_v26 = vadd.f32 %v1915_v35, %v831_v15 }
 0x10c   :  { %v1574_v45 = vpop.f32.mrf.mxu0 }
 0x10d   :  { %v1580_v46 = vpop.f32.mrf.mxu1  ;;  %1670 = vtanh.f32 %v832_v26 }
 0x10e   :  { %v869_v47 = vpop.f32.mrf.mxu0 }
 0x10f   :  { %v909_v48 = vpop.f32.mrf.mxu1 }
 0x110   :  { %v1585_v49 = vpop.f32.mrf.mxu0  ;;  %v910_v16 = vadd.f32 %v909_v48, %v869_v47 }
 0x111   :  { %v1591_v50 = vpop.f32.mrf.mxu1 }
 0x112   :  { %v872_v51 = vpop.f32.mrf.mxu0 }
 0x113   :  { %v912_v52 = vpop.f32.mrf.mxu1  ;;  %v1669_v51 = vpop.eup %1668 }
 0x114   :  { %v1586_v53 = vpop.f32.mrf.mxu0 }
 0x115   :  { %v1592_v54 = vpop.f32.mrf.mxu1  ;;  %v705_v53 = vadd.f32 %v1669_v51, %v1921_v36 }
 0x116   :  { %v954_v55 = vpop.f32.mrf.mxu0 }
 0x117   :  { %v998_v56 = vpop.f32.mrf.mxu1  ;;  %v960_v23 = vadd.f32 %v954_v55, %v910_v16 }
 0x118   :  { %v1597_v57 = vpop.f32.mrf.mxu0 }
 0x119   :  { %v1603_v58 = vpop.f32.mrf.mxu1  ;;  %v961_v28 = vadd.f32 %v1915_v35, %v960_v23 }
 0x11a   :  { %v957_v59 = vpop.f32.mrf.mxu0  ;;  %v1671_v52 = vpop.eup %1670 }
 0x11b   :  { %v1001_v60 = vpop.f32.mrf.mxu1  ;;  %1672 = vtanh.f32 %v961_v28  ;;  %v834_v55 = vadd.f32 %v1671_v52, %v705_v53 }
 0x11c   :  { %v1598_v61 = vpop.f32.mrf.mxu0 }
 0x11d   :  { %v1604_v62 = vpop.f32.mrf.mxu1 }
 0x11e   :  { %v1038_v63 = vpop.f32.mrf.mxu0  ;;  %v1355_v62 = vpop.permute.xlu0 %1354 }
 0x11f   :  { %v1083_v0 = vpop.f32.mrf.mxu1  ;;  %v1039_v17 = vadd.f32 %v1038_v63, %v998_v56 }
 0x120   :  { %v1609_v1 = vpop.f32.mrf.mxu0 }
 0x121   :  { %v1615_v2 = vpop.f32.mrf.mxu1  ;;  %v1089_v27 = vadd.f32 %v1083_v0, %v1039_v17 }
 0x122   :  { %v1041_v3 = vpop.f32.mrf.mxu0 }
 0x123   :  { %v1086_v4 = vpop.f32.mrf.mxu1  ;;  %v1090_v33 = vadd.f32 %v1915_v35, %v1089_v27 }
 0x124   :  { %v1610_v5 = vpop.f32.mrf.mxu0 }
 0x125   :  { %v1616_v6 = vpop.f32.mrf.mxu1  ;;  %1674 = vtanh.f32 %v1090_v33 }
 0x126   :  { %v1127_v7 = vpop.f32.mrf.mxu0 }
 0x127   :  { %v1167_v10 = vpop.f32.mrf.mxu1 }
 0x128   :  { %v1621_v11 = vpop.f32.mrf.mxu0  ;;  %v1168_v18 = vadd.f32 %v1167_v10, %v1127_v7  ;;  %v1673_v54 = vpop.eup %1672 }
 0x129   :  { %v1627_v13 = vpop.f32.mrf.mxu1  ;;  %v963_v57 = vadd.f32 %v1673_v54, %v834_v55 }
 0x12a   :  { %v1130_v14 = vpop.f32.mrf.mxu0 }
 0x12b   :  { %v1170_v20 = vpop.f32.mrf.mxu1 }
 0x12c   :  { %v1622_v21 = vpop.f32.mrf.mxu0 }
 0x12d   :  { %v1628_v24 = vpop.f32.mrf.mxu1 }
 0x12e   :  { %v1212_v25 = vpop.f32.mrf.mxu0 }
 0x12f   :  { %v1256_v19 = vpop.f32.mrf.mxu1  ;;  %v1218_v30 = vadd.f32 %v1212_v25, %v1168_v18 }
 0x130   :  { %v1633_v29 = vpop.f32.mrf.mxu0 }
 0x131   :  { %v1639_v31 = vpop.f32.mrf.mxu1  ;;  %v1219_v38 = vadd.f32 %v1915_v35, %v1218_v30 }
 0x132   :  { %v1215_v32 = vpop.f32.mrf.mxu0  ;;  %v1675_v56 = vpop.eup %1674 }
 0x133   :  { %v1259_v34 = vpop.f32.mrf.mxu1  ;;  %1676 = vtanh.f32 %v1219_v38  ;;  %v1092_v59 = vadd.f32 %v1675_v56, %v963_v57 }
 0x134   :  { %v1634_v37 = vpop.f32.mrf.mxu0 }
 0x135   :  { %v1640_v39 = vpop.f32.mrf.mxu1 }
 0x136   :  { %v1296_v40 = vpop.f32.mrf.mxu0 }
 0x137   :  { %v1297_v41 = vadd.f32 %v1296_v40, %v1256_v19  ;;  %v1341_v42 = vpop.f32.mrf.mxu1 }
 0x138   :  { %v1645_v43 = vpop.f32.mrf.mxu0 }
 0x139   :  { %v1347_v44 = vadd.f32 %v1341_v42, %v1297_v41  ;;  %v1651_v45 = vpop.f32.mrf.mxu1 }
 0x13a   :  { %v1299_v46 = vpop.f32.mrf.mxu0 }
 0x13b   :  { %v1348_v47 = vadd.f32 %v1915_v35, %v1347_v44  ;;  %v1344_v48 = vpop.f32.mrf.mxu1 }
 0x13c   :  { %v1646_v49 = vpop.f32.mrf.mxu0 }
 0x13d   :  { %1678 = vtanh.f32 %v1348_v47  ;;  %v1652_v50 = vpop.f32.mrf.mxu1 }
 0x140   :  { %v1677_v58 = vpop.eup %1676 }
 0x141   :  { %v1221_v60 = vadd.f32 %v1677_v58, %v1092_v59 }
 0x14a   :  { %v1679_v61 = vpop.eup %1678 }
 0x14b   :  { %v1350_v63 = vadd.f32 %v1679_v61, %v1221_v60 }
 0x14d   :  { %v1357_v35 = vmul.f32 %v1355_v62, %v1350_v63 }
 0x14f   :  { %1359 = vst.msk [vmem:[%s1937_s4] sm:$0x3] %vm1358_vm2, %v1357_v35 }

</bundles_post_ra>
